<compile_context>
chip_gen: v7x
topology: tpu7x:2x2x1
jax: 0.10.0
libtpu: 0.0.40
codegen_flags: <defaults>
</compile_context>

<pallas_src>
import jax
import jax.numpy as jnp
import numpy as np
from jax import lax
from jax.experimental import pallas as pl
from jax.experimental.pallas import tpu as pltpu

LANES = 128  # lane width of the packed weight slab and the pred output slab

CONFIG = dict(
    sens_size=16,
    priv_size=8,
    hidden_size=32,
    num_rnn_layers=2,
    seq_length=8,
    hidden_to_pred_shape=[64, 32],
    batch=2,
)


# ------------------------ host-side weight packing --------------------------
def pack_params(gru_params, attn_params, mlp_params):
    """Pack every weight into one (rows, 128) f32 slab, 8-row aligned sections.

    GRU per layer : wx = w_ih.T (in, 3H)  gates r|z|n along lanes
                    wh = w_hh.T (H, 3H)
                    gb = [b_ih ; b_hh]  (2, 3H)
    Attention     : wqkv = [wq.T | wk.T | wv.T] (H, 3H), bqkv (1, 3H)
    MLP per layer : w.T (d_in, d_out), b (1, d_out)   (last layer's lanes are
                    zero-padded to 128 so pred is stored as a lane-dense slab).
    Returns (slab, layout) where layout[name] = sublane offset in the slab.
    """
    parts, layout = [], {}
    off = 0

    def add(name, arr):
        nonlocal off
        arr = jnp.asarray(arr, jnp.float32)
        rows, lanes = arr.shape
        pad_r = (-rows) % 8
        arr = jnp.pad(arr, ((0, pad_r), (0, LANES - lanes)))
        parts.append(arr)
        layout[name] = off
        off += rows + pad_r

    for l, (w_ih, w_hh, b_ih, b_hh) in enumerate(gru_params):
        add(f"wx{l}", w_ih.T)                                   # (in, 3H)
        add(f"wh{l}", w_hh.T)                                   # (H, 3H)
        add(f"gb{l}", jnp.concatenate([b_ih, b_hh], axis=0))    # (2, 3H)

    wq, bq, wk, bk, wv, bv = attn_params
    add("wqkv", jnp.concatenate([wq.T, wk.T, wv.T], axis=1))    # (H, 3H)
    add("bqkv", jnp.concatenate([bq, bk, bv], axis=1))          # (1, 3H)

    for i, (w, b) in enumerate(mlp_params):
        add(f"mw{i}", w.T)
        add(f"mb{i}", b)

    return jnp.concatenate(parts, axis=0), layout


# ------------------------------ fused kernel -------------------------------
def make_fused_kernel(L, H, S, B, in_dim, mlp_dims, layout):
    n_mlp = len(mlp_dims) - 1
    inv_sqrt_d = 1.0 / (H ** 0.5)
    f32 = jnp.float32

    def sigmoid(x):  # exact identity, single EUP tanh (no divide on v5e)
        return 0.5 * jnp.tanh(0.5 * x) + 0.5

    def kernel(x_ref, w_ref, pred_ref, next_h_ref):
        # x_ref     : (S*B, in)  time-major, row = t*B + b
        # w_ref     : (rows, 128) packed weight slab
        # pred_ref  : (B*S, 128) lane-dense pred slab, row = b*S + t
        # next_h_ref: (L*B, H)
        seq = x_ref[...]                                      # (S*B, in)
        hs = []

        # -------------------- GRU stack (reset hidden = zeros) -------------
        for l in range(L):
            d_in = in_dim if l == 0 else H
            wx = w_ref[layout[f"wx{l}"]:layout[f"wx{l}"] + d_in, :]   # (d_in,128)
            wh = w_ref[layout[f"wh{l}"]:layout[f"wh{l}"] + H, :]      # (H,128)
            boff = layout[f"gb{l}"]
            bi = w_ref[boff:boff + 1, :]                              # (1,128)
            bh = w_ref[boff + 1:boff + 2, :]                          # (1,128)

            # Hoisted input projections for all S steps & both batch elems.
            gi_all = jnp.dot(seq, wx, preferred_element_type=f32) + bi
            gis = [gi_all[t * B:(t + 1) * B, :] for t in range(S)]    # (B,128) each

            h = jnp.zeros((B, H), f32)
            hs = []
            for t in range(S):                                # S=8, unrolled
                gh = jnp.dot(h, wh, preferred_element_type=f32) + bh  # (B,128)
                pre = gis[t]
                rz = sigmoid(pre[:, 0:2 * H] + gh[:, 0:2 * H])        # (B,64)
                r = rz[:, 0:H]
                z = rz[:, H:2 * H]
                n = jnp.tanh(pre[:, 2 * H:3 * H] + r * gh[:, 2 * H:3 * H])
                h = (1.0 - z) * n + z * h                             # (B,H)
                hs.append(h)

            next_h_ref[l * B:(l + 1) * B, :] = h
            if l < L - 1:                                     # next layer input
                seq = jnp.concatenate(hs, axis=0)             # (S*B, H) time-major

        # Batch-major last-layer output for attention / MLP: row = b*S + t.
        seq_bm = jnp.concatenate(
            [jnp.concatenate([hs[t][b:b + 1, :] for t in range(S)], axis=0)
             for b in range(B)], axis=0)                      # (B*S, H)

        # -------------------- self-attention --------------------------------
        qoff, bqoff = layout["wqkv"], layout["bqkv"]
        wqkv = w_ref[qoff:qoff + H, :]                        # (H,128)
        bqkv = w_ref[bqoff:bqoff + 1, :]                      # (1,128)
        qkv = jnp.dot(seq_bm, wqkv, preferred_element_type=f32) + bqkv  # (B*S,128)

        weighted = []
        for b in range(B):
            blk = qkv[b * S:(b + 1) * S, :]
            qb, kb, vb = blk[:, 0:H], blk[:, H:2 * H], blk[:, 2 * H:3 * H]
            scores = lax.dot_general(qb, kb, (((1,), (1,)), ((), ())),
                                     preferred_element_type=f32) * inv_sqrt_d
            m = jnp.max(scores, axis=-1, keepdims=True)
            e = jnp.exp(scores - m)
            denom = jnp.sum(e, axis=-1, keepdims=True)
            attn = e * pl.reciprocal(denom, approx=True)
            weighted.append(jnp.dot(attn, vb, preferred_element_type=f32))
        hcur = jnp.concatenate(weighted, axis=0)              # (B*S, H)

        # -------------------- MLP head ---------------------------------------
        for i in range(n_mlp):
            d_in = mlp_dims[i]
            lane_w = LANES if i == n_mlp - 1 else mlp_dims[i + 1]
            woff, mboff = layout[f"mw{i}"], layout[f"mb{i}"]
            w = w_ref[woff:woff + d_in, 0:lane_w]
            bb = w_ref[mboff:mboff + 1, 0:lane_w]
            hcur = jnp.dot(hcur, w, preferred_element_type=f32) + bb
            if i < n_mlp - 1:
                hcur = jnp.where(hcur > 0, hcur, 0.01 * hcur)  # LeakyReLU(0.01)

        pred_ref[...] = hcur                                  # one unmasked store

    return kernel


# ------------------------------ forward wrapper ------------------------------
def make_forward(L, H, S, B, in_dim, mlp_dims, priv_size, layout):
    kernel = make_fused_kernel(L, H, S, B, in_dim, mlp_dims, layout)

    @jax.jit
    def forward(x, slab):
        # Equivalent of BaseMode.forward(x, hidden) with
        # reset_hidden_each_epoch=True (incoming hidden is ignored, h0 = 0).
        x_tm = jnp.transpose(x, (1, 0, 2)).reshape(S * B, in_dim)  # time-major
        pred_pad, next_h_flat = pl.pallas_call(
            kernel,
            out_shape=(
                jax.ShapeDtypeStruct((B * S, LANES), jnp.float32),
                jax.ShapeDtypeStruct((L * B, H), jnp.float32),
            ),
        )(x_tm, slab)
        pred = pred_pad[:, :priv_size].reshape(B, S, priv_size)
        next_hidden = next_h_flat.reshape(L, B, H)
        return pred, next_hidden

    return forward


# ------------------------------ reference (pure JAX) -------------------------
def reference_forward(x_bsi, gru_params, attn_params, mlp_params):
    x = jnp.transpose(x_bsi, (1, 0, 2))
    S, B, _ = x.shape
    L = len(gru_params)
    H = gru_params[0][1].shape[1]
    h = jnp.zeros((L, B, H), jnp.float32)
    outs = []
    for t in range(S):
        inp = x[t]
        new_h = []
        for l in range(L):
            w_ih, w_hh, b_ih, b_hh = gru_params[l]
            gi = inp @ w_ih.T + b_ih
            gh = h[l] @ w_hh.T + b_hh
            r = jax.nn.sigmoid(gi[:, :H] + gh[:, :H])
            z = jax.nn.sigmoid(gi[:, H:2 * H] + gh[:, H:2 * H])
            n = jnp.tanh(gi[:, 2 * H:] + r * gh[:, 2 * H:])
            hn = (1.0 - z) * n + z * h[l]
            new_h.append(hn)
            inp = hn
        h = jnp.stack(new_h)
        outs.append(inp)
    out = jnp.transpose(jnp.stack(outs), (1, 0, 2))  # (B,S,H)

    wq, bq, wk, bk, wv, bv = attn_params
    q = out @ wq.T + bq
    k = out @ wk.T + bk
    v = out @ wv.T + bv
    scores = jnp.einsum('bqd,bkd->bqk', q, k) / (H ** 0.5)
    attn = jax.nn.softmax(scores, axis=2)
    weighted = jnp.einsum('bqk,bkd->bqd', attn, v)

    hcur = weighted
    for i, (w, bb) in enumerate(mlp_params):
        hcur = hcur @ w.T + bb
        if i < len(mlp_params) - 1:
            hcur = jnp.where(hcur > 0, hcur, 0.01 * hcur)
    return hcur, h


# ------------------------------ param init ----------------------------------
def init_params(cfg, key):
    H, I, P, L = (cfg['hidden_size'], cfg['sens_size'],
                  cfg['priv_size'], cfg['num_rnn_layers'])

    def nrm(k, shape, scale=0.1):
        return (scale * jax.random.normal(k, shape)).astype(jnp.float32)

    keys = iter(jax.random.split(key, 64))

    gru_params = []
    for l in range(L):
        in_dim = I if l == 0 else H
        w_ih = nrm(next(keys), (3 * H, in_dim))
        w_hh = nrm(next(keys), (3 * H, H))
        b_ih = nrm(next(keys), (1, 3 * H))
        b_hh = nrm(next(keys), (1, 3 * H))
        gru_params.append((w_ih, w_hh, b_ih, b_hh))

    attn_params = []
    for _ in range(3):  # query, key, value
        attn_params.append(nrm(next(keys), (H, H)))
        attn_params.append(nrm(next(keys), (1, H)))
    attn_params = tuple(attn_params)

    mlp_dims = [H] + list(cfg['hidden_to_pred_shape']) + [P]
    mlp_params = []
    for d_in, d_out in zip(mlp_dims[:-1], mlp_dims[1:]):
        w = nrm(next(keys), (d_out, d_in), scale=1.0 / np.sqrt(2) * 0.1)
        b = nrm(next(keys), (1, d_out))
        mlp_params.append((w, b))

    return gru_params, attn_params, mlp_params


# ------------------------------ main -----------------------------------------
if __name__ == "__main__":
    cfg = CONFIG
    B, S, I = cfg['batch'], cfg['seq_length'], cfg['sens_size']
    H, L, P = cfg['hidden_size'], cfg['num_rnn_layers'], cfg['priv_size']
    mlp_dims = [H] + list(cfg['hidden_to_pred_shape']) + [P]

    root = jax.random.PRNGKey(0)
    kparams, kx = jax.random.split(root)
    gru_params, attn_params, mlp_params = init_params(cfg, kparams)

    x = jax.random.normal(kx, (B, S, I), jnp.float32)

    slab, layout = pack_params(gru_params, attn_params, mlp_params)
    forward = make_forward(L, H, S, B, I, mlp_dims, P, layout)

    pred, next_h = forward(x, slab)
    pred = jax.block_until_ready(pred)
    next_h = jax.block_until_ready(next_h)

    ref_pred, ref_h = jax.jit(reference_forward)(
        x, gru_params, attn_params, mlp_params)
    np.testing.assert_allclose(np.asarray(pred), np.asarray(ref_pred),
                               rtol=1e-3, atol=1e-3)
    np.testing.assert_allclose(np.asarray(next_h), np.asarray(ref_h),
                               rtol=1e-3, atol=1e-3)

    assert pred.shape == (B, S, P)
    assert next_h.shape == (L, B, H)
    print("KERNEL_OK")
</pallas_src>

<mosaic_0001>
module attributes {stable_mosaic.version = 11 : i64} {
  func.func @kernel(%arg0: memref<16x16xf32, #tpu.memory_space<vmem>>, %arg1: memref<320x128xf32, #tpu.memory_space<vmem>>, %arg2: memref<16x128xf32, #tpu.memory_space<vmem>>, %arg3: memref<4x32xf32, #tpu.memory_space<vmem>>) attributes {dimension_semantics = [], scalar_prefetch = 0 : i64, scratch_operands = 0 : i64, tpu.core_type = #tpu.core_type<tc>} {
    %c0 = arith.constant 0 : index
    %c0_0 = arith.constant 0 : index
    %0 = vector.load %arg0[%c0, %c0_0] : memref<16x16xf32, #tpu.memory_space<vmem>>, vector<16x16xf32>
    %c0_1 = arith.constant 0 : index
    %c0_2 = arith.constant 0 : index
    %1 = vector.load %arg1[%c0_1, %c0_2] : memref<320x128xf32, #tpu.memory_space<vmem>>, vector<16x128xf32>
    %c16 = arith.constant 16 : index
    %c0_3 = arith.constant 0 : index
    %2 = vector.load %arg1[%c16, %c0_3] : memref<320x128xf32, #tpu.memory_space<vmem>>, vector<32x128xf32>
    %c48 = arith.constant 48 : index
    %c0_4 = arith.constant 0 : index
    %3 = vector.load %arg1[%c48, %c0_4] : memref<320x128xf32, #tpu.memory_space<vmem>>, vector<1x128xf32>
    %c49 = arith.constant 49 : index
    %c0_5 = arith.constant 0 : index
    %4 = vector.load %arg1[%c49, %c0_5] : memref<320x128xf32, #tpu.memory_space<vmem>>, vector<1x128xf32>
    %cst = arith.constant dense<0.000000e+00> : vector<16x128xf32>
    %5 = tpu.matmul %0, %1, %cst {dimension_numbers = #tpu.dot_dimension_numbers<[1], [0], [0], [1], [0, 0, 1, 1], [], []>} : vector<16x16xf32>, vector<16x128xf32>, vector<16x128xf32> -> vector<16x128xf32>
    %6 = vector.broadcast %3 : vector<1x128xf32> to vector<16x128xf32>
    %7 = arith.addf %5, %6 : vector<16x128xf32>
    %8 = vector.extract_strided_slice %7 {offsets = [0, 0], sizes = [2, 128], strides = [1, 1]} : vector<16x128xf32> to vector<2x128xf32>
    %9 = vector.extract_strided_slice %7 {offsets = [2, 0], sizes = [2, 128], strides = [1, 1]} : vector<16x128xf32> to vector<2x128xf32>
    %10 = vector.extract_strided_slice %7 {offsets = [4, 0], sizes = [2, 128], strides = [1, 1]} : vector<16x128xf32> to vector<2x128xf32>
    %11 = vector.extract_strided_slice %7 {offsets = [6, 0], sizes = [2, 128], strides = [1, 1]} : vector<16x128xf32> to vector<2x128xf32>
    %12 = vector.extract_strided_slice %7 {offsets = [8, 0], sizes = [2, 128], strides = [1, 1]} : vector<16x128xf32> to vector<2x128xf32>
    %13 = vector.extract_strided_slice %7 {offsets = [10, 0], sizes = [2, 128], strides = [1, 1]} : vector<16x128xf32> to vector<2x128xf32>
    %14 = vector.extract_strided_slice %7 {offsets = [12, 0], sizes = [2, 128], strides = [1, 1]} : vector<16x128xf32> to vector<2x128xf32>
    %15 = vector.extract_strided_slice %7 {offsets = [14, 0], sizes = [2, 128], strides = [1, 1]} : vector<16x128xf32> to vector<2x128xf32>
    %cst_6 = arith.constant 0.000000e+00 : f32
    %16 = vector.broadcast %cst_6 : f32 to vector<2x32xf32>
    %cst_7 = arith.constant dense<0.000000e+00> : vector<2x128xf32>
    %17 = tpu.matmul %16, %2, %cst_7 {dimension_numbers = #tpu.dot_dimension_numbers<[1], [0], [0], [1], [0, 0, 1, 1], [], []>} : vector<2x32xf32>, vector<32x128xf32>, vector<2x128xf32> -> vector<2x128xf32>
    %18 = vector.broadcast %4 : vector<1x128xf32> to vector<2x128xf32>
    %19 = arith.addf %17, %18 : vector<2x128xf32>
    %20 = vector.extract_strided_slice %8 {offsets = [0, 0], sizes = [2, 64], strides = [1, 1]} : vector<2x128xf32> to vector<2x64xf32>
    %21 = vector.extract_strided_slice %19 {offsets = [0, 0], sizes = [2, 64], strides = [1, 1]} : vector<2x128xf32> to vector<2x64xf32>
    %22 = arith.addf %20, %21 : vector<2x64xf32>
    %cst_8 = arith.constant 5.000000e-01 : f32
    %23 = vector.broadcast %cst_8 : f32 to vector<2x64xf32>
    %24 = arith.mulf %23, %22 : vector<2x64xf32>
    %25 = math.tanh %24 : vector<2x64xf32>
    %cst_9 = arith.constant 5.000000e-01 : f32
    %26 = vector.broadcast %cst_9 : f32 to vector<2x64xf32>
    %27 = arith.mulf %26, %25 : vector<2x64xf32>
    %cst_10 = arith.constant 5.000000e-01 : f32
    %28 = vector.broadcast %cst_10 : f32 to vector<2x64xf32>
    %29 = arith.addf %27, %28 : vector<2x64xf32>
    %30 = vector.extract_strided_slice %29 {offsets = [0, 0], sizes = [2, 32], strides = [1, 1]} : vector<2x64xf32> to vector<2x32xf32>
    %31 = vector.extract_strided_slice %29 {offsets = [0, 32], sizes = [2, 32], strides = [1, 1]} : vector<2x64xf32> to vector<2x32xf32>
    %32 = vector.extract_strided_slice %8 {offsets = [0, 64], sizes = [2, 32], strides = [1, 1]} : vector<2x128xf32> to vector<2x32xf32>
    %33 = vector.extract_strided_slice %19 {offsets = [0, 64], sizes = [2, 32], strides = [1, 1]} : vector<2x128xf32> to vector<2x32xf32>
    %34 = arith.mulf %30, %33 : vector<2x32xf32>
    %35 = arith.addf %32, %34 : vector<2x32xf32>
    %36 = math.tanh %35 : vector<2x32xf32>
    %cst_11 = arith.constant 1.000000e+00 : f32
    %37 = vector.broadcast %cst_11 : f32 to vector<2x32xf32>
    %38 = arith.subf %37, %31 : vector<2x32xf32>
    %39 = arith.mulf %38, %36 : vector<2x32xf32>
    %40 = arith.mulf %31, %16 : vector<2x32xf32>
    %41 = arith.addf %39, %40 : vector<2x32xf32>
    %cst_12 = arith.constant dense<0.000000e+00> : vector<2x128xf32>
    %42 = tpu.matmul %41, %2, %cst_12 {dimension_numbers = #tpu.dot_dimension_numbers<[1], [0], [0], [1], [0, 0, 1, 1], [], []>} : vector<2x32xf32>, vector<32x128xf32>, vector<2x128xf32> -> vector<2x128xf32>
    %43 = vector.broadcast %4 : vector<1x128xf32> to vector<2x128xf32>
    %44 = arith.addf %42, %43 : vector<2x128xf32>
    %45 = vector.extract_strided_slice %9 {offsets = [0, 0], sizes = [2, 64], strides = [1, 1]} : vector<2x128xf32> to vector<2x64xf32>
    %46 = vector.extract_strided_slice %44 {offsets = [0, 0], sizes = [2, 64], strides = [1, 1]} : vector<2x128xf32> to vector<2x64xf32>
    %47 = arith.addf %45, %46 : vector<2x64xf32>
    %cst_13 = arith.constant 5.000000e-01 : f32
    %48 = vector.broadcast %cst_13 : f32 to vector<2x64xf32>
    %49 = arith.mulf %48, %47 : vector<2x64xf32>
    %50 = math.tanh %49 : vector<2x64xf32>
    %cst_14 = arith.constant 5.000000e-01 : f32
    %51 = vector.broadcast %cst_14 : f32 to vector<2x64xf32>
    %52 = arith.mulf %51, %50 : vector<2x64xf32>
    %cst_15 = arith.constant 5.000000e-01 : f32
    %53 = vector.broadcast %cst_15 : f32 to vector<2x64xf32>
    %54 = arith.addf %52, %53 : vector<2x64xf32>
    %55 = vector.extract_strided_slice %54 {offsets = [0, 0], sizes = [2, 32], strides = [1, 1]} : vector<2x64xf32> to vector<2x32xf32>
    %56 = vector.extract_strided_slice %54 {offsets = [0, 32], sizes = [2, 32], strides = [1, 1]} : vector<2x64xf32> to vector<2x32xf32>
    %57 = vector.extract_strided_slice %9 {offsets = [0, 64], sizes = [2, 32], strides = [1, 1]} : vector<2x128xf32> to vector<2x32xf32>
    %58 = vector.extract_strided_slice %44 {offsets = [0, 64], sizes = [2, 32], strides = [1, 1]} : vector<2x128xf32> to vector<2x32xf32>
    %59 = arith.mulf %55, %58 : vector<2x32xf32>
    %60 = arith.addf %57, %59 : vector<2x32xf32>
    %61 = math.tanh %60 : vector<2x32xf32>
    %cst_16 = arith.constant 1.000000e+00 : f32
    %62 = vector.broadcast %cst_16 : f32 to vector<2x32xf32>
    %63 = arith.subf %62, %56 : vector<2x32xf32>
    %64 = arith.mulf %63, %61 : vector<2x32xf32>
    %65 = arith.mulf %56, %41 : vector<2x32xf32>
    %66 = arith.addf %64, %65 : vector<2x32xf32>
    %cst_17 = arith.constant dense<0.000000e+00> : vector<2x128xf32>
    %67 = tpu.matmul %66, %2, %cst_17 {dimension_numbers = #tpu.dot_dimension_numbers<[1], [0], [0], [1], [0, 0, 1, 1], [], []>} : vector<2x32xf32>, vector<32x128xf32>, vector<2x128xf32> -> vector<2x128xf32>
    %68 = vector.broadcast %4 : vector<1x128xf32> to vector<2x128xf32>
    %69 = arith.addf %67, %68 : vector<2x128xf32>
    %70 = vector.extract_strided_slice %10 {offsets = [0, 0], sizes = [2, 64], strides = [1, 1]} : vector<2x128xf32> to vector<2x64xf32>
    %71 = vector.extract_strided_slice %69 {offsets = [0, 0], sizes = [2, 64], strides = [1, 1]} : vector<2x128xf32> to vector<2x64xf32>
    %72 = arith.addf %70, %71 : vector<2x64xf32>
    %cst_18 = arith.constant 5.000000e-01 : f32
    %73 = vector.broadcast %cst_18 : f32 to vector<2x64xf32>
    %74 = arith.mulf %73, %72 : vector<2x64xf32>
    %75 = math.tanh %74 : vector<2x64xf32>
    %cst_19 = arith.constant 5.000000e-01 : f32
    %76 = vector.broadcast %cst_19 : f32 to vector<2x64xf32>
    %77 = arith.mulf %76, %75 : vector<2x64xf32>
    %cst_20 = arith.constant 5.000000e-01 : f32
    %78 = vector.broadcast %cst_20 : f32 to vector<2x64xf32>
    %79 = arith.addf %77, %78 : vector<2x64xf32>
    %80 = vector.extract_strided_slice %79 {offsets = [0, 0], sizes = [2, 32], strides = [1, 1]} : vector<2x64xf32> to vector<2x32xf32>
    %81 = vector.extract_strided_slice %79 {offsets = [0, 32], sizes = [2, 32], strides = [1, 1]} : vector<2x64xf32> to vector<2x32xf32>
    %82 = vector.extract_strided_slice %10 {offsets = [0, 64], sizes = [2, 32], strides = [1, 1]} : vector<2x128xf32> to vector<2x32xf32>
    %83 = vector.extract_strided_slice %69 {offsets = [0, 64], sizes = [2, 32], strides = [1, 1]} : vector<2x128xf32> to vector<2x32xf32>
    %84 = arith.mulf %80, %83 : vector<2x32xf32>
    %85 = arith.addf %82, %84 : vector<2x32xf32>
    %86 = math.tanh %85 : vector<2x32xf32>
    %cst_21 = arith.constant 1.000000e+00 : f32
    %87 = vector.broadcast %cst_21 : f32 to vector<2x32xf32>
    %88 = arith.subf %87, %81 : vector<2x32xf32>
    %89 = arith.mulf %88, %86 : vector<2x32xf32>
    %90 = arith.mulf %81, %66 : vector<2x32xf32>
    %91 = arith.addf %89, %90 : vector<2x32xf32>
    %cst_22 = arith.constant dense<0.000000e+00> : vector<2x128xf32>
    %92 = tpu.matmul %91, %2, %cst_22 {dimension_numbers = #tpu.dot_dimension_numbers<[1], [0], [0], [1], [0, 0, 1, 1], [], []>} : vector<2x32xf32>, vector<32x128xf32>, vector<2x128xf32> -> vector<2x128xf32>
    %93 = vector.broadcast %4 : vector<1x128xf32> to vector<2x128xf32>
    %94 = arith.addf %92, %93 : vector<2x128xf32>
    %95 = vector.extract_strided_slice %11 {offsets = [0, 0], sizes = [2, 64], strides = [1, 1]} : vector<2x128xf32> to vector<2x64xf32>
    %96 = vector.extract_strided_slice %94 {offsets = [0, 0], sizes = [2, 64], strides = [1, 1]} : vector<2x128xf32> to vector<2x64xf32>
    %97 = arith.addf %95, %96 : vector<2x64xf32>
    %cst_23 = arith.constant 5.000000e-01 : f32
    %98 = vector.broadcast %cst_23 : f32 to vector<2x64xf32>
    %99 = arith.mulf %98, %97 : vector<2x64xf32>
    %100 = math.tanh %99 : vector<2x64xf32>
    %cst_24 = arith.constant 5.000000e-01 : f32
    %101 = vector.broadcast %cst_24 : f32 to vector<2x64xf32>
    %102 = arith.mulf %101, %100 : vector<2x64xf32>
    %cst_25 = arith.constant 5.000000e-01 : f32
    %103 = vector.broadcast %cst_25 : f32 to vector<2x64xf32>
    %104 = arith.addf %102, %103 : vector<2x64xf32>
    %105 = vector.extract_strided_slice %104 {offsets = [0, 0], sizes = [2, 32], strides = [1, 1]} : vector<2x64xf32> to vector<2x32xf32>
    %106 = vector.extract_strided_slice %104 {offsets = [0, 32], sizes = [2, 32], strides = [1, 1]} : vector<2x64xf32> to vector<2x32xf32>
    %107 = vector.extract_strided_slice %11 {offsets = [0, 64], sizes = [2, 32], strides = [1, 1]} : vector<2x128xf32> to vector<2x32xf32>
    %108 = vector.extract_strided_slice %94 {offsets = [0, 64], sizes = [2, 32], strides = [1, 1]} : vector<2x128xf32> to vector<2x32xf32>
    %109 = arith.mulf %105, %108 : vector<2x32xf32>
    %110 = arith.addf %107, %109 : vector<2x32xf32>
    %111 = math.tanh %110 : vector<2x32xf32>
    %cst_26 = arith.constant 1.000000e+00 : f32
    %112 = vector.broadcast %cst_26 : f32 to vector<2x32xf32>
    %113 = arith.subf %112, %106 : vector<2x32xf32>
    %114 = arith.mulf %113, %111 : vector<2x32xf32>
    %115 = arith.mulf %106, %91 : vector<2x32xf32>
    %116 = arith.addf %114, %115 : vector<2x32xf32>
    %cst_27 = arith.constant dense<0.000000e+00> : vector<2x128xf32>
    %117 = tpu.matmul %116, %2, %cst_27 {dimension_numbers = #tpu.dot_dimension_numbers<[1], [0], [0], [1], [0, 0, 1, 1], [], []>} : vector<2x32xf32>, vector<32x128xf32>, vector<2x128xf32> -> vector<2x128xf32>
    %118 = vector.broadcast %4 : vector<1x128xf32> to vector<2x128xf32>
    %119 = arith.addf %117, %118 : vector<2x128xf32>
    %120 = vector.extract_strided_slice %12 {offsets = [0, 0], sizes = [2, 64], strides = [1, 1]} : vector<2x128xf32> to vector<2x64xf32>
    %121 = vector.extract_strided_slice %119 {offsets = [0, 0], sizes = [2, 64], strides = [1, 1]} : vector<2x128xf32> to vector<2x64xf32>
    %122 = arith.addf %120, %121 : vector<2x64xf32>
    %cst_28 = arith.constant 5.000000e-01 : f32
    %123 = vector.broadcast %cst_28 : f32 to vector<2x64xf32>
    %124 = arith.mulf %123, %122 : vector<2x64xf32>
    %125 = math.tanh %124 : vector<2x64xf32>
    %cst_29 = arith.constant 5.000000e-01 : f32
    %126 = vector.broadcast %cst_29 : f32 to vector<2x64xf32>
    %127 = arith.mulf %126, %125 : vector<2x64xf32>
    %cst_30 = arith.constant 5.000000e-01 : f32
    %128 = vector.broadcast %cst_30 : f32 to vector<2x64xf32>
    %129 = arith.addf %127, %128 : vector<2x64xf32>
    %130 = vector.extract_strided_slice %129 {offsets = [0, 0], sizes = [2, 32], strides = [1, 1]} : vector<2x64xf32> to vector<2x32xf32>
    %131 = vector.extract_strided_slice %129 {offsets = [0, 32], sizes = [2, 32], strides = [1, 1]} : vector<2x64xf32> to vector<2x32xf32>
    %132 = vector.extract_strided_slice %12 {offsets = [0, 64], sizes = [2, 32], strides = [1, 1]} : vector<2x128xf32> to vector<2x32xf32>
    %133 = vector.extract_strided_slice %119 {offsets = [0, 64], sizes = [2, 32], strides = [1, 1]} : vector<2x128xf32> to vector<2x32xf32>
    %134 = arith.mulf %130, %133 : vector<2x32xf32>
    %135 = arith.addf %132, %134 : vector<2x32xf32>
    %136 = math.tanh %135 : vector<2x32xf32>
    %cst_31 = arith.constant 1.000000e+00 : f32
    %137 = vector.broadcast %cst_31 : f32 to vector<2x32xf32>
    %138 = arith.subf %137, %131 : vector<2x32xf32>
    %139 = arith.mulf %138, %136 : vector<2x32xf32>
    %140 = arith.mulf %131, %116 : vector<2x32xf32>
    %141 = arith.addf %139, %140 : vector<2x32xf32>
    %cst_32 = arith.constant dense<0.000000e+00> : vector<2x128xf32>
    %142 = tpu.matmul %141, %2, %cst_32 {dimension_numbers = #tpu.dot_dimension_numbers<[1], [0], [0], [1], [0, 0, 1, 1], [], []>} : vector<2x32xf32>, vector<32x128xf32>, vector<2x128xf32> -> vector<2x128xf32>
    %143 = vector.broadcast %4 : vector<1x128xf32> to vector<2x128xf32>
    %144 = arith.addf %142, %143 : vector<2x128xf32>
    %145 = vector.extract_strided_slice %13 {offsets = [0, 0], sizes = [2, 64], strides = [1, 1]} : vector<2x128xf32> to vector<2x64xf32>
    %146 = vector.extract_strided_slice %144 {offsets = [0, 0], sizes = [2, 64], strides = [1, 1]} : vector<2x128xf32> to vector<2x64xf32>
    %147 = arith.addf %145, %146 : vector<2x64xf32>
    %cst_33 = arith.constant 5.000000e-01 : f32
    %148 = vector.broadcast %cst_33 : f32 to vector<2x64xf32>
    %149 = arith.mulf %148, %147 : vector<2x64xf32>
    %150 = math.tanh %149 : vector<2x64xf32>
    %cst_34 = arith.constant 5.000000e-01 : f32
    %151 = vector.broadcast %cst_34 : f32 to vector<2x64xf32>
    %152 = arith.mulf %151, %150 : vector<2x64xf32>
    %cst_35 = arith.constant 5.000000e-01 : f32
    %153 = vector.broadcast %cst_35 : f32 to vector<2x64xf32>
    %154 = arith.addf %152, %153 : vector<2x64xf32>
    %155 = vector.extract_strided_slice %154 {offsets = [0, 0], sizes = [2, 32], strides = [1, 1]} : vector<2x64xf32> to vector<2x32xf32>
    %156 = vector.extract_strided_slice %154 {offsets = [0, 32], sizes = [2, 32], strides = [1, 1]} : vector<2x64xf32> to vector<2x32xf32>
    %157 = vector.extract_strided_slice %13 {offsets = [0, 64], sizes = [2, 32], strides = [1, 1]} : vector<2x128xf32> to vector<2x32xf32>
    %158 = vector.extract_strided_slice %144 {offsets = [0, 64], sizes = [2, 32], strides = [1, 1]} : vector<2x128xf32> to vector<2x32xf32>
    %159 = arith.mulf %155, %158 : vector<2x32xf32>
    %160 = arith.addf %157, %159 : vector<2x32xf32>
    %161 = math.tanh %160 : vector<2x32xf32>
    %cst_36 = arith.constant 1.000000e+00 : f32
    %162 = vector.broadcast %cst_36 : f32 to vector<2x32xf32>
    %163 = arith.subf %162, %156 : vector<2x32xf32>
    %164 = arith.mulf %163, %161 : vector<2x32xf32>
    %165 = arith.mulf %156, %141 : vector<2x32xf32>
    %166 = arith.addf %164, %165 : vector<2x32xf32>
    %cst_37 = arith.constant dense<0.000000e+00> : vector<2x128xf32>
    %167 = tpu.matmul %166, %2, %cst_37 {dimension_numbers = #tpu.dot_dimension_numbers<[1], [0], [0], [1], [0, 0, 1, 1], [], []>} : vector<2x32xf32>, vector<32x128xf32>, vector<2x128xf32> -> vector<2x128xf32>
    %168 = vector.broadcast %4 : vector<1x128xf32> to vector<2x128xf32>
    %169 = arith.addf %167, %168 : vector<2x128xf32>
    %170 = vector.extract_strided_slice %14 {offsets = [0, 0], sizes = [2, 64], strides = [1, 1]} : vector<2x128xf32> to vector<2x64xf32>
    %171 = vector.extract_strided_slice %169 {offsets = [0, 0], sizes = [2, 64], strides = [1, 1]} : vector<2x128xf32> to vector<2x64xf32>
    %172 = arith.addf %170, %171 : vector<2x64xf32>
    %cst_38 = arith.constant 5.000000e-01 : f32
    %173 = vector.broadcast %cst_38 : f32 to vector<2x64xf32>
    %174 = arith.mulf %173, %172 : vector<2x64xf32>
    %175 = math.tanh %174 : vector<2x64xf32>
    %cst_39 = arith.constant 5.000000e-01 : f32
    %176 = vector.broadcast %cst_39 : f32 to vector<2x64xf32>
    %177 = arith.mulf %176, %175 : vector<2x64xf32>
    %cst_40 = arith.constant 5.000000e-01 : f32
    %178 = vector.broadcast %cst_40 : f32 to vector<2x64xf32>
    %179 = arith.addf %177, %178 : vector<2x64xf32>
    %180 = vector.extract_strided_slice %179 {offsets = [0, 0], sizes = [2, 32], strides = [1, 1]} : vector<2x64xf32> to vector<2x32xf32>
    %181 = vector.extract_strided_slice %179 {offsets = [0, 32], sizes = [2, 32], strides = [1, 1]} : vector<2x64xf32> to vector<2x32xf32>
    %182 = vector.extract_strided_slice %14 {offsets = [0, 64], sizes = [2, 32], strides = [1, 1]} : vector<2x128xf32> to vector<2x32xf32>
    %183 = vector.extract_strided_slice %169 {offsets = [0, 64], sizes = [2, 32], strides = [1, 1]} : vector<2x128xf32> to vector<2x32xf32>
    %184 = arith.mulf %180, %183 : vector<2x32xf32>
    %185 = arith.addf %182, %184 : vector<2x32xf32>
    %186 = math.tanh %185 : vector<2x32xf32>
    %cst_41 = arith.constant 1.000000e+00 : f32
    %187 = vector.broadcast %cst_41 : f32 to vector<2x32xf32>
    %188 = arith.subf %187, %181 : vector<2x32xf32>
    %189 = arith.mulf %188, %186 : vector<2x32xf32>
    %190 = arith.mulf %181, %166 : vector<2x32xf32>
    %191 = arith.addf %189, %190 : vector<2x32xf32>
    %cst_42 = arith.constant dense<0.000000e+00> : vector<2x128xf32>
    %192 = tpu.matmul %191, %2, %cst_42 {dimension_numbers = #tpu.dot_dimension_numbers<[1], [0], [0], [1], [0, 0, 1, 1], [], []>} : vector<2x32xf32>, vector<32x128xf32>, vector<2x128xf32> -> vector<2x128xf32>
    %193 = vector.broadcast %4 : vector<1x128xf32> to vector<2x128xf32>
    %194 = arith.addf %192, %193 : vector<2x128xf32>
    %195 = vector.extract_strided_slice %15 {offsets = [0, 0], sizes = [2, 64], strides = [1, 1]} : vector<2x128xf32> to vector<2x64xf32>
    %196 = vector.extract_strided_slice %194 {offsets = [0, 0], sizes = [2, 64], strides = [1, 1]} : vector<2x128xf32> to vector<2x64xf32>
    %197 = arith.addf %195, %196 : vector<2x64xf32>
    %cst_43 = arith.constant 5.000000e-01 : f32
    %198 = vector.broadcast %cst_43 : f32 to vector<2x64xf32>
    %199 = arith.mulf %198, %197 : vector<2x64xf32>
    %200 = math.tanh %199 : vector<2x64xf32>
    %cst_44 = arith.constant 5.000000e-01 : f32
    %201 = vector.broadcast %cst_44 : f32 to vector<2x64xf32>
    %202 = arith.mulf %201, %200 : vector<2x64xf32>
    %cst_45 = arith.constant 5.000000e-01 : f32
    %203 = vector.broadcast %cst_45 : f32 to vector<2x64xf32>
    %204 = arith.addf %202, %203 : vector<2x64xf32>
    %205 = vector.extract_strided_slice %204 {offsets = [0, 0], sizes = [2, 32], strides = [1, 1]} : vector<2x64xf32> to vector<2x32xf32>
    %206 = vector.extract_strided_slice %204 {offsets = [0, 32], sizes = [2, 32], strides = [1, 1]} : vector<2x64xf32> to vector<2x32xf32>
    %207 = vector.extract_strided_slice %15 {offsets = [0, 64], sizes = [2, 32], strides = [1, 1]} : vector<2x128xf32> to vector<2x32xf32>
    %208 = vector.extract_strided_slice %194 {offsets = [0, 64], sizes = [2, 32], strides = [1, 1]} : vector<2x128xf32> to vector<2x32xf32>
    %209 = arith.mulf %205, %208 : vector<2x32xf32>
    %210 = arith.addf %207, %209 : vector<2x32xf32>
    %211 = math.tanh %210 : vector<2x32xf32>
    %cst_46 = arith.constant 1.000000e+00 : f32
    %212 = vector.broadcast %cst_46 : f32 to vector<2x32xf32>
    %213 = arith.subf %212, %206 : vector<2x32xf32>
    %214 = arith.mulf %213, %211 : vector<2x32xf32>
    %215 = arith.mulf %206, %191 : vector<2x32xf32>
    %216 = arith.addf %214, %215 : vector<2x32xf32>
    %c0_47 = arith.constant 0 : index
    %c0_48 = arith.constant 0 : index
    %217 = vector.load %arg3[%c0_47, %c0_48] : memref<4x32xf32, #tpu.memory_space<vmem>>, vector<2x32xf32>
    tpu.vector_store %arg3[%c0_47, %c0_48], %216 {strides = array<i32>} : memref<4x32xf32, #tpu.memory_space<vmem>>, vector<2x32xf32>,
    %218 = tpu.concatenate %41, %66, %91, %116, %141, %166, %191, %216 in 0 : vector<2x32xf32>, vector<2x32xf32>, vector<2x32xf32>, vector<2x32xf32>, vector<2x32xf32>, vector<2x32xf32>, vector<2x32xf32>, vector<2x32xf32> -> vector<16x32xf32>
    %c56 = arith.constant 56 : index
    %c0_49 = arith.constant 0 : index
    %219 = vector.load %arg1[%c56, %c0_49] : memref<320x128xf32, #tpu.memory_space<vmem>>, vector<32x128xf32>
    %c88 = arith.constant 88 : index
    %c0_50 = arith.constant 0 : index
    %220 = vector.load %arg1[%c88, %c0_50] : memref<320x128xf32, #tpu.memory_space<vmem>>, vector<32x128xf32>
    %c120 = arith.constant 120 : index
    %c0_51 = arith.constant 0 : index
    %221 = vector.load %arg1[%c120, %c0_51] : memref<320x128xf32, #tpu.memory_space<vmem>>, vector<1x128xf32>
    %c121 = arith.constant 121 : index
    %c0_52 = arith.constant 0 : index
    %222 = vector.load %arg1[%c121, %c0_52] : memref<320x128xf32, #tpu.memory_space<vmem>>, vector<1x128xf32>
    %cst_53 = arith.constant dense<0.000000e+00> : vector<16x128xf32>
    %223 = tpu.matmul %218, %219, %cst_53 {dimension_numbers = #tpu.dot_dimension_numbers<[1], [0], [0], [1], [0, 0, 1, 1], [], []>} : vector<16x32xf32>, vector<32x128xf32>, vector<16x128xf32> -> vector<16x128xf32>
    %224 = vector.broadcast %221 : vector<1x128xf32> to vector<16x128xf32>
    %225 = arith.addf %223, %224 : vector<16x128xf32>
    %226 = vector.extract_strided_slice %225 {offsets = [0, 0], sizes = [2, 128], strides = [1, 1]} : vector<16x128xf32> to vector<2x128xf32>
    %227 = vector.extract_strided_slice %225 {offsets = [2, 0], sizes = [2, 128], strides = [1, 1]} : vector<16x128xf32> to vector<2x128xf32>
    %228 = vector.extract_strided_slice %225 {offsets = [4, 0], sizes = [2, 128], strides = [1, 1]} : vector<16x128xf32> to vector<2x128xf32>
    %229 = vector.extract_strided_slice %225 {offsets = [6, 0], sizes = [2, 128], strides = [1, 1]} : vector<16x128xf32> to vector<2x128xf32>
    %230 = vector.extract_strided_slice %225 {offsets = [8, 0], sizes = [2, 128], strides = [1, 1]} : vector<16x128xf32> to vector<2x128xf32>
    %231 = vector.extract_strided_slice %225 {offsets = [10, 0], sizes = [2, 128], strides = [1, 1]} : vector<16x128xf32> to vector<2x128xf32>
    %232 = vector.extract_strided_slice %225 {offsets = [12, 0], sizes = [2, 128], strides = [1, 1]} : vector<16x128xf32> to vector<2x128xf32>
    %233 = vector.extract_strided_slice %225 {offsets = [14, 0], sizes = [2, 128], strides = [1, 1]} : vector<16x128xf32> to vector<2x128xf32>
    %cst_54 = arith.constant 0.000000e+00 : f32
    %234 = vector.broadcast %cst_54 : f32 to vector<2x32xf32>
    %cst_55 = arith.constant dense<0.000000e+00> : vector<2x128xf32>
    %235 = tpu.matmul %234, %220, %cst_55 {dimension_numbers = #tpu.dot_dimension_numbers<[1], [0], [0], [1], [0, 0, 1, 1], [], []>} : vector<2x32xf32>, vector<32x128xf32>, vector<2x128xf32> -> vector<2x128xf32>
    %236 = vector.broadcast %222 : vector<1x128xf32> to vector<2x128xf32>
    %237 = arith.addf %235, %236 : vector<2x128xf32>
    %238 = vector.extract_strided_slice %226 {offsets = [0, 0], sizes = [2, 64], strides = [1, 1]} : vector<2x128xf32> to vector<2x64xf32>
    %239 = vector.extract_strided_slice %237 {offsets = [0, 0], sizes = [2, 64], strides = [1, 1]} : vector<2x128xf32> to vector<2x64xf32>
    %240 = arith.addf %238, %239 : vector<2x64xf32>
    %cst_56 = arith.constant 5.000000e-01 : f32
    %241 = vector.broadcast %cst_56 : f32 to vector<2x64xf32>
    %242 = arith.mulf %241, %240 : vector<2x64xf32>
    %243 = math.tanh %242 : vector<2x64xf32>
    %cst_57 = arith.constant 5.000000e-01 : f32
    %244 = vector.broadcast %cst_57 : f32 to vector<2x64xf32>
    %245 = arith.mulf %244, %243 : vector<2x64xf32>
    %cst_58 = arith.constant 5.000000e-01 : f32
    %246 = vector.broadcast %cst_58 : f32 to vector<2x64xf32>
    %247 = arith.addf %245, %246 : vector<2x64xf32>
    %248 = vector.extract_strided_slice %247 {offsets = [0, 0], sizes = [2, 32], strides = [1, 1]} : vector<2x64xf32> to vector<2x32xf32>
    %249 = vector.extract_strided_slice %247 {offsets = [0, 32], sizes = [2, 32], strides = [1, 1]} : vector<2x64xf32> to vector<2x32xf32>
    %250 = vector.extract_strided_slice %226 {offsets = [0, 64], sizes = [2, 32], strides = [1, 1]} : vector<2x128xf32> to vector<2x32xf32>
    %251 = vector.extract_strided_slice %237 {offsets = [0, 64], sizes = [2, 32], strides = [1, 1]} : vector<2x128xf32> to vector<2x32xf32>
    %252 = arith.mulf %248, %251 : vector<2x32xf32>
    %253 = arith.addf %250, %252 : vector<2x32xf32>
    %254 = math.tanh %253 : vector<2x32xf32>
    %cst_59 = arith.constant 1.000000e+00 : f32
    %255 = vector.broadcast %cst_59 : f32 to vector<2x32xf32>
    %256 = arith.subf %255, %249 : vector<2x32xf32>
    %257 = arith.mulf %256, %254 : vector<2x32xf32>
    %258 = arith.mulf %249, %234 : vector<2x32xf32>
    %259 = arith.addf %257, %258 : vector<2x32xf32>
    %cst_60 = arith.constant dense<0.000000e+00> : vector<2x128xf32>
    %260 = tpu.matmul %259, %220, %cst_60 {dimension_numbers = #tpu.dot_dimension_numbers<[1], [0], [0], [1], [0, 0, 1, 1], [], []>} : vector<2x32xf32>, vector<32x128xf32>, vector<2x128xf32> -> vector<2x128xf32>
    %261 = vector.broadcast %222 : vector<1x128xf32> to vector<2x128xf32>
    %262 = arith.addf %260, %261 : vector<2x128xf32>
    %263 = vector.extract_strided_slice %227 {offsets = [0, 0], sizes = [2, 64], strides = [1, 1]} : vector<2x128xf32> to vector<2x64xf32>
    %264 = vector.extract_strided_slice %262 {offsets = [0, 0], sizes = [2, 64], strides = [1, 1]} : vector<2x128xf32> to vector<2x64xf32>
    %265 = arith.addf %263, %264 : vector<2x64xf32>
    %cst_61 = arith.constant 5.000000e-01 : f32
    %266 = vector.broadcast %cst_61 : f32 to vector<2x64xf32>
    %267 = arith.mulf %266, %265 : vector<2x64xf32>
    %268 = math.tanh %267 : vector<2x64xf32>
    %cst_62 = arith.constant 5.000000e-01 : f32
    %269 = vector.broadcast %cst_62 : f32 to vector<2x64xf32>
    %270 = arith.mulf %269, %268 : vector<2x64xf32>
    %cst_63 = arith.constant 5.000000e-01 : f32
    %271 = vector.broadcast %cst_63 : f32 to vector<2x64xf32>
    %272 = arith.addf %270, %271 : vector<2x64xf32>
    %273 = vector.extract_strided_slice %272 {offsets = [0, 0], sizes = [2, 32], strides = [1, 1]} : vector<2x64xf32> to vector<2x32xf32>
    %274 = vector.extract_strided_slice %272 {offsets = [0, 32], sizes = [2, 32], strides = [1, 1]} : vector<2x64xf32> to vector<2x32xf32>
    %275 = vector.extract_strided_slice %227 {offsets = [0, 64], sizes = [2, 32], strides = [1, 1]} : vector<2x128xf32> to vector<2x32xf32>
    %276 = vector.extract_strided_slice %262 {offsets = [0, 64], sizes = [2, 32], strides = [1, 1]} : vector<2x128xf32> to vector<2x32xf32>
    %277 = arith.mulf %273, %276 : vector<2x32xf32>
    %278 = arith.addf %275, %277 : vector<2x32xf32>
    %279 = math.tanh %278 : vector<2x32xf32>
    %cst_64 = arith.constant 1.000000e+00 : f32
    %280 = vector.broadcast %cst_64 : f32 to vector<2x32xf32>
    %281 = arith.subf %280, %274 : vector<2x32xf32>
    %282 = arith.mulf %281, %279 : vector<2x32xf32>
    %283 = arith.mulf %274, %259 : vector<2x32xf32>
    %284 = arith.addf %282, %283 : vector<2x32xf32>
    %cst_65 = arith.constant dense<0.000000e+00> : vector<2x128xf32>
    %285 = tpu.matmul %284, %220, %cst_65 {dimension_numbers = #tpu.dot_dimension_numbers<[1], [0], [0], [1], [0, 0, 1, 1], [], []>} : vector<2x32xf32>, vector<32x128xf32>, vector<2x128xf32> -> vector<2x128xf32>
    %286 = vector.broadcast %222 : vector<1x128xf32> to vector<2x128xf32>
    %287 = arith.addf %285, %286 : vector<2x128xf32>
    %288 = vector.extract_strided_slice %228 {offsets = [0, 0], sizes = [2, 64], strides = [1, 1]} : vector<2x128xf32> to vector<2x64xf32>
    %289 = vector.extract_strided_slice %287 {offsets = [0, 0], sizes = [2, 64], strides = [1, 1]} : vector<2x128xf32> to vector<2x64xf32>
    %290 = arith.addf %288, %289 : vector<2x64xf32>
    %cst_66 = arith.constant 5.000000e-01 : f32
    %291 = vector.broadcast %cst_66 : f32 to vector<2x64xf32>
    %292 = arith.mulf %291, %290 : vector<2x64xf32>
    %293 = math.tanh %292 : vector<2x64xf32>
    %cst_67 = arith.constant 5.000000e-01 : f32
    %294 = vector.broadcast %cst_67 : f32 to vector<2x64xf32>
    %295 = arith.mulf %294, %293 : vector<2x64xf32>
    %cst_68 = arith.constant 5.000000e-01 : f32
    %296 = vector.broadcast %cst_68 : f32 to vector<2x64xf32>
    %297 = arith.addf %295, %296 : vector<2x64xf32>
    %298 = vector.extract_strided_slice %297 {offsets = [0, 0], sizes = [2, 32], strides = [1, 1]} : vector<2x64xf32> to vector<2x32xf32>
    %299 = vector.extract_strided_slice %297 {offsets = [0, 32], sizes = [2, 32], strides = [1, 1]} : vector<2x64xf32> to vector<2x32xf32>
    %300 = vector.extract_strided_slice %228 {offsets = [0, 64], sizes = [2, 32], strides = [1, 1]} : vector<2x128xf32> to vector<2x32xf32>
    %301 = vector.extract_strided_slice %287 {offsets = [0, 64], sizes = [2, 32], strides = [1, 1]} : vector<2x128xf32> to vector<2x32xf32>
    %302 = arith.mulf %298, %301 : vector<2x32xf32>
    %303 = arith.addf %300, %302 : vector<2x32xf32>
    %304 = math.tanh %303 : vector<2x32xf32>
    %cst_69 = arith.constant 1.000000e+00 : f32
    %305 = vector.broadcast %cst_69 : f32 to vector<2x32xf32>
    %306 = arith.subf %305, %299 : vector<2x32xf32>
    %307 = arith.mulf %306, %304 : vector<2x32xf32>
    %308 = arith.mulf %299, %284 : vector<2x32xf32>
    %309 = arith.addf %307, %308 : vector<2x32xf32>
    %cst_70 = arith.constant dense<0.000000e+00> : vector<2x128xf32>
    %310 = tpu.matmul %309, %220, %cst_70 {dimension_numbers = #tpu.dot_dimension_numbers<[1], [0], [0], [1], [0, 0, 1, 1], [], []>} : vector<2x32xf32>, vector<32x128xf32>, vector<2x128xf32> -> vector<2x128xf32>
    %311 = vector.broadcast %222 : vector<1x128xf32> to vector<2x128xf32>
    %312 = arith.addf %310, %311 : vector<2x128xf32>
    %313 = vector.extract_strided_slice %229 {offsets = [0, 0], sizes = [2, 64], strides = [1, 1]} : vector<2x128xf32> to vector<2x64xf32>
    %314 = vector.extract_strided_slice %312 {offsets = [0, 0], sizes = [2, 64], strides = [1, 1]} : vector<2x128xf32> to vector<2x64xf32>
    %315 = arith.addf %313, %314 : vector<2x64xf32>
    %cst_71 = arith.constant 5.000000e-01 : f32
    %316 = vector.broadcast %cst_71 : f32 to vector<2x64xf32>
    %317 = arith.mulf %316, %315 : vector<2x64xf32>
    %318 = math.tanh %317 : vector<2x64xf32>
    %cst_72 = arith.constant 5.000000e-01 : f32
    %319 = vector.broadcast %cst_72 : f32 to vector<2x64xf32>
    %320 = arith.mulf %319, %318 : vector<2x64xf32>
    %cst_73 = arith.constant 5.000000e-01 : f32
    %321 = vector.broadcast %cst_73 : f32 to vector<2x64xf32>
    %322 = arith.addf %320, %321 : vector<2x64xf32>
    %323 = vector.extract_strided_slice %322 {offsets = [0, 0], sizes = [2, 32], strides = [1, 1]} : vector<2x64xf32> to vector<2x32xf32>
    %324 = vector.extract_strided_slice %322 {offsets = [0, 32], sizes = [2, 32], strides = [1, 1]} : vector<2x64xf32> to vector<2x32xf32>
    %325 = vector.extract_strided_slice %229 {offsets = [0, 64], sizes = [2, 32], strides = [1, 1]} : vector<2x128xf32> to vector<2x32xf32>
    %326 = vector.extract_strided_slice %312 {offsets = [0, 64], sizes = [2, 32], strides = [1, 1]} : vector<2x128xf32> to vector<2x32xf32>
    %327 = arith.mulf %323, %326 : vector<2x32xf32>
    %328 = arith.addf %325, %327 : vector<2x32xf32>
    %329 = math.tanh %328 : vector<2x32xf32>
    %cst_74 = arith.constant 1.000000e+00 : f32
    %330 = vector.broadcast %cst_74 : f32 to vector<2x32xf32>
    %331 = arith.subf %330, %324 : vector<2x32xf32>
    %332 = arith.mulf %331, %329 : vector<2x32xf32>
    %333 = arith.mulf %324, %309 : vector<2x32xf32>
    %334 = arith.addf %332, %333 : vector<2x32xf32>
    %cst_75 = arith.constant dense<0.000000e+00> : vector<2x128xf32>
    %335 = tpu.matmul %334, %220, %cst_75 {dimension_numbers = #tpu.dot_dimension_numbers<[1], [0], [0], [1], [0, 0, 1, 1], [], []>} : vector<2x32xf32>, vector<32x128xf32>, vector<2x128xf32> -> vector<2x128xf32>
    %336 = vector.broadcast %222 : vector<1x128xf32> to vector<2x128xf32>
    %337 = arith.addf %335, %336 : vector<2x128xf32>
    %338 = vector.extract_strided_slice %230 {offsets = [0, 0], sizes = [2, 64], strides = [1, 1]} : vector<2x128xf32> to vector<2x64xf32>
    %339 = vector.extract_strided_slice %337 {offsets = [0, 0], sizes = [2, 64], strides = [1, 1]} : vector<2x128xf32> to vector<2x64xf32>
    %340 = arith.addf %338, %339 : vector<2x64xf32>
    %cst_76 = arith.constant 5.000000e-01 : f32
    %341 = vector.broadcast %cst_76 : f32 to vector<2x64xf32>
    %342 = arith.mulf %341, %340 : vector<2x64xf32>
    %343 = math.tanh %342 : vector<2x64xf32>
    %cst_77 = arith.constant 5.000000e-01 : f32
    %344 = vector.broadcast %cst_77 : f32 to vector<2x64xf32>
    %345 = arith.mulf %344, %343 : vector<2x64xf32>
    %cst_78 = arith.constant 5.000000e-01 : f32
    %346 = vector.broadcast %cst_78 : f32 to vector<2x64xf32>
    %347 = arith.addf %345, %346 : vector<2x64xf32>
    %348 = vector.extract_strided_slice %347 {offsets = [0, 0], sizes = [2, 32], strides = [1, 1]} : vector<2x64xf32> to vector<2x32xf32>
    %349 = vector.extract_strided_slice %347 {offsets = [0, 32], sizes = [2, 32], strides = [1, 1]} : vector<2x64xf32> to vector<2x32xf32>
    %350 = vector.extract_strided_slice %230 {offsets = [0, 64], sizes = [2, 32], strides = [1, 1]} : vector<2x128xf32> to vector<2x32xf32>
    %351 = vector.extract_strided_slice %337 {offsets = [0, 64], sizes = [2, 32], strides = [1, 1]} : vector<2x128xf32> to vector<2x32xf32>
    %352 = arith.mulf %348, %351 : vector<2x32xf32>
    %353 = arith.addf %350, %352 : vector<2x32xf32>
    %354 = math.tanh %353 : vector<2x32xf32>
    %cst_79 = arith.constant 1.000000e+00 : f32
    %355 = vector.broadcast %cst_79 : f32 to vector<2x32xf32>
    %356 = arith.subf %355, %349 : vector<2x32xf32>
    %357 = arith.mulf %356, %354 : vector<2x32xf32>
    %358 = arith.mulf %349, %334 : vector<2x32xf32>
    %359 = arith.addf %357, %358 : vector<2x32xf32>
    %cst_80 = arith.constant dense<0.000000e+00> : vector<2x128xf32>
    %360 = tpu.matmul %359, %220, %cst_80 {dimension_numbers = #tpu.dot_dimension_numbers<[1], [0], [0], [1], [0, 0, 1, 1], [], []>} : vector<2x32xf32>, vector<32x128xf32>, vector<2x128xf32> -> vector<2x128xf32>
    %361 = vector.broadcast %222 : vector<1x128xf32> to vector<2x128xf32>
    %362 = arith.addf %360, %361 : vector<2x128xf32>
    %363 = vector.extract_strided_slice %231 {offsets = [0, 0], sizes = [2, 64], strides = [1, 1]} : vector<2x128xf32> to vector<2x64xf32>
    %364 = vector.extract_strided_slice %362 {offsets = [0, 0], sizes = [2, 64], strides = [1, 1]} : vector<2x128xf32> to vector<2x64xf32>
    %365 = arith.addf %363, %364 : vector<2x64xf32>
    %cst_81 = arith.constant 5.000000e-01 : f32
    %366 = vector.broadcast %cst_81 : f32 to vector<2x64xf32>
    %367 = arith.mulf %366, %365 : vector<2x64xf32>
    %368 = math.tanh %367 : vector<2x64xf32>
    %cst_82 = arith.constant 5.000000e-01 : f32
    %369 = vector.broadcast %cst_82 : f32 to vector<2x64xf32>
    %370 = arith.mulf %369, %368 : vector<2x64xf32>
    %cst_83 = arith.constant 5.000000e-01 : f32
    %371 = vector.broadcast %cst_83 : f32 to vector<2x64xf32>
    %372 = arith.addf %370, %371 : vector<2x64xf32>
    %373 = vector.extract_strided_slice %372 {offsets = [0, 0], sizes = [2, 32], strides = [1, 1]} : vector<2x64xf32> to vector<2x32xf32>
    %374 = vector.extract_strided_slice %372 {offsets = [0, 32], sizes = [2, 32], strides = [1, 1]} : vector<2x64xf32> to vector<2x32xf32>
    %375 = vector.extract_strided_slice %231 {offsets = [0, 64], sizes = [2, 32], strides = [1, 1]} : vector<2x128xf32> to vector<2x32xf32>
    %376 = vector.extract_strided_slice %362 {offsets = [0, 64], sizes = [2, 32], strides = [1, 1]} : vector<2x128xf32> to vector<2x32xf32>
    %377 = arith.mulf %373, %376 : vector<2x32xf32>
    %378 = arith.addf %375, %377 : vector<2x32xf32>
    %379 = math.tanh %378 : vector<2x32xf32>
    %cst_84 = arith.constant 1.000000e+00 : f32
    %380 = vector.broadcast %cst_84 : f32 to vector<2x32xf32>
    %381 = arith.subf %380, %374 : vector<2x32xf32>
    %382 = arith.mulf %381, %379 : vector<2x32xf32>
    %383 = arith.mulf %374, %359 : vector<2x32xf32>
    %384 = arith.addf %382, %383 : vector<2x32xf32>
    %cst_85 = arith.constant dense<0.000000e+00> : vector<2x128xf32>
    %385 = tpu.matmul %384, %220, %cst_85 {dimension_numbers = #tpu.dot_dimension_numbers<[1], [0], [0], [1], [0, 0, 1, 1], [], []>} : vector<2x32xf32>, vector<32x128xf32>, vector<2x128xf32> -> vector<2x128xf32>
    %386 = vector.broadcast %222 : vector<1x128xf32> to vector<2x128xf32>
    %387 = arith.addf %385, %386 : vector<2x128xf32>
    %388 = vector.extract_strided_slice %232 {offsets = [0, 0], sizes = [2, 64], strides = [1, 1]} : vector<2x128xf32> to vector<2x64xf32>
    %389 = vector.extract_strided_slice %387 {offsets = [0, 0], sizes = [2, 64], strides = [1, 1]} : vector<2x128xf32> to vector<2x64xf32>
    %390 = arith.addf %388, %389 : vector<2x64xf32>
    %cst_86 = arith.constant 5.000000e-01 : f32
    %391 = vector.broadcast %cst_86 : f32 to vector<2x64xf32>
    %392 = arith.mulf %391, %390 : vector<2x64xf32>
    %393 = math.tanh %392 : vector<2x64xf32>
    %cst_87 = arith.constant 5.000000e-01 : f32
    %394 = vector.broadcast %cst_87 : f32 to vector<2x64xf32>
    %395 = arith.mulf %394, %393 : vector<2x64xf32>
    %cst_88 = arith.constant 5.000000e-01 : f32
    %396 = vector.broadcast %cst_88 : f32 to vector<2x64xf32>
    %397 = arith.addf %395, %396 : vector<2x64xf32>
    %398 = vector.extract_strided_slice %397 {offsets = [0, 0], sizes = [2, 32], strides = [1, 1]} : vector<2x64xf32> to vector<2x32xf32>
    %399 = vector.extract_strided_slice %397 {offsets = [0, 32], sizes = [2, 32], strides = [1, 1]} : vector<2x64xf32> to vector<2x32xf32>
    %400 = vector.extract_strided_slice %232 {offsets = [0, 64], sizes = [2, 32], strides = [1, 1]} : vector<2x128xf32> to vector<2x32xf32>
    %401 = vector.extract_strided_slice %387 {offsets = [0, 64], sizes = [2, 32], strides = [1, 1]} : vector<2x128xf32> to vector<2x32xf32>
    %402 = arith.mulf %398, %401 : vector<2x32xf32>
    %403 = arith.addf %400, %402 : vector<2x32xf32>
    %404 = math.tanh %403 : vector<2x32xf32>
    %cst_89 = arith.constant 1.000000e+00 : f32
    %405 = vector.broadcast %cst_89 : f32 to vector<2x32xf32>
    %406 = arith.subf %405, %399 : vector<2x32xf32>
    %407 = arith.mulf %406, %404 : vector<2x32xf32>
    %408 = arith.mulf %399, %384 : vector<2x32xf32>
    %409 = arith.addf %407, %408 : vector<2x32xf32>
    %cst_90 = arith.constant dense<0.000000e+00> : vector<2x128xf32>
    %410 = tpu.matmul %409, %220, %cst_90 {dimension_numbers = #tpu.dot_dimension_numbers<[1], [0], [0], [1], [0, 0, 1, 1], [], []>} : vector<2x32xf32>, vector<32x128xf32>, vector<2x128xf32> -> vector<2x128xf32>
    %411 = vector.broadcast %222 : vector<1x128xf32> to vector<2x128xf32>
    %412 = arith.addf %410, %411 : vector<2x128xf32>
    %413 = vector.extract_strided_slice %233 {offsets = [0, 0], sizes = [2, 64], strides = [1, 1]} : vector<2x128xf32> to vector<2x64xf32>
    %414 = vector.extract_strided_slice %412 {offsets = [0, 0], sizes = [2, 64], strides = [1, 1]} : vector<2x128xf32> to vector<2x64xf32>
    %415 = arith.addf %413, %414 : vector<2x64xf32>
    %cst_91 = arith.constant 5.000000e-01 : f32
    %416 = vector.broadcast %cst_91 : f32 to vector<2x64xf32>
    %417 = arith.mulf %416, %415 : vector<2x64xf32>
    %418 = math.tanh %417 : vector<2x64xf32>
    %cst_92 = arith.constant 5.000000e-01 : f32
    %419 = vector.broadcast %cst_92 : f32 to vector<2x64xf32>
    %420 = arith.mulf %419, %418 : vector<2x64xf32>
    %cst_93 = arith.constant 5.000000e-01 : f32
    %421 = vector.broadcast %cst_93 : f32 to vector<2x64xf32>
    %422 = arith.addf %420, %421 : vector<2x64xf32>
    %423 = vector.extract_strided_slice %422 {offsets = [0, 0], sizes = [2, 32], strides = [1, 1]} : vector<2x64xf32> to vector<2x32xf32>
    %424 = vector.extract_strided_slice %422 {offsets = [0, 32], sizes = [2, 32], strides = [1, 1]} : vector<2x64xf32> to vector<2x32xf32>
    %425 = vector.extract_strided_slice %233 {offsets = [0, 64], sizes = [2, 32], strides = [1, 1]} : vector<2x128xf32> to vector<2x32xf32>
    %426 = vector.extract_strided_slice %412 {offsets = [0, 64], sizes = [2, 32], strides = [1, 1]} : vector<2x128xf32> to vector<2x32xf32>
    %427 = arith.mulf %423, %426 : vector<2x32xf32>
    %428 = arith.addf %425, %427 : vector<2x32xf32>
    %429 = math.tanh %428 : vector<2x32xf32>
    %cst_94 = arith.constant 1.000000e+00 : f32
    %430 = vector.broadcast %cst_94 : f32 to vector<2x32xf32>
    %431 = arith.subf %430, %424 : vector<2x32xf32>
    %432 = arith.mulf %431, %429 : vector<2x32xf32>
    %433 = arith.mulf %424, %409 : vector<2x32xf32>
    %434 = arith.addf %432, %433 : vector<2x32xf32>
    %c2 = arith.constant 2 : index
    %c0_95 = arith.constant 0 : index
    %435 = vector.load %arg3[%c2, %c0_95] : memref<4x32xf32, #tpu.memory_space<vmem>>, vector<2x32xf32>
    tpu.vector_store %arg3[%c2, %c0_95], %434 {strides = array<i32>} : memref<4x32xf32, #tpu.memory_space<vmem>>, vector<2x32xf32>,
    %436 = vector.extract_strided_slice %259 {offsets = [0, 0], sizes = [1, 32], strides = [1, 1]} : vector<2x32xf32> to vector<1x32xf32>
    %437 = vector.extract_strided_slice %284 {offsets = [0, 0], sizes = [1, 32], strides = [1, 1]} : vector<2x32xf32> to vector<1x32xf32>
    %438 = vector.extract_strided_slice %309 {offsets = [0, 0], sizes = [1, 32], strides = [1, 1]} : vector<2x32xf32> to vector<1x32xf32>
    %439 = vector.extract_strided_slice %334 {offsets = [0, 0], sizes = [1, 32], strides = [1, 1]} : vector<2x32xf32> to vector<1x32xf32>
    %440 = vector.extract_strided_slice %359 {offsets = [0, 0], sizes = [1, 32], strides = [1, 1]} : vector<2x32xf32> to vector<1x32xf32>
    %441 = vector.extract_strided_slice %384 {offsets = [0, 0], sizes = [1, 32], strides = [1, 1]} : vector<2x32xf32> to vector<1x32xf32>
    %442 = vector.extract_strided_slice %409 {offsets = [0, 0], sizes = [1, 32], strides = [1, 1]} : vector<2x32xf32> to vector<1x32xf32>
    %443 = vector.extract_strided_slice %434 {offsets = [0, 0], sizes = [1, 32], strides = [1, 1]} : vector<2x32xf32> to vector<1x32xf32>
    %444 = tpu.concatenate %436, %437, %438, %439, %440, %441, %442, %443 in 0 : vector<1x32xf32>, vector<1x32xf32>, vector<1x32xf32>, vector<1x32xf32>, vector<1x32xf32>, vector<1x32xf32>, vector<1x32xf32>, vector<1x32xf32> -> vector<8x32xf32>
    %445 = vector.extract_strided_slice %259 {offsets = [1, 0], sizes = [1, 32], strides = [1, 1]} : vector<2x32xf32> to vector<1x32xf32>
    %446 = vector.extract_strided_slice %284 {offsets = [1, 0], sizes = [1, 32], strides = [1, 1]} : vector<2x32xf32> to vector<1x32xf32>
    %447 = vector.extract_strided_slice %309 {offsets = [1, 0], sizes = [1, 32], strides = [1, 1]} : vector<2x32xf32> to vector<1x32xf32>
    %448 = vector.extract_strided_slice %334 {offsets = [1, 0], sizes = [1, 32], strides = [1, 1]} : vector<2x32xf32> to vector<1x32xf32>
    %449 = vector.extract_strided_slice %359 {offsets = [1, 0], sizes = [1, 32], strides = [1, 1]} : vector<2x32xf32> to vector<1x32xf32>
    %450 = vector.extract_strided_slice %384 {offsets = [1, 0], sizes = [1, 32], strides = [1, 1]} : vector<2x32xf32> to vector<1x32xf32>
    %451 = vector.extract_strided_slice %409 {offsets = [1, 0], sizes = [1, 32], strides = [1, 1]} : vector<2x32xf32> to vector<1x32xf32>
    %452 = vector.extract_strided_slice %434 {offsets = [1, 0], sizes = [1, 32], strides = [1, 1]} : vector<2x32xf32> to vector<1x32xf32>
    %453 = tpu.concatenate %445, %446, %447, %448, %449, %450, %451, %452 in 0 : vector<1x32xf32>, vector<1x32xf32>, vector<1x32xf32>, vector<1x32xf32>, vector<1x32xf32>, vector<1x32xf32>, vector<1x32xf32>, vector<1x32xf32> -> vector<8x32xf32>
    %454 = tpu.concatenate %444, %453 in 0 : vector<8x32xf32>, vector<8x32xf32> -> vector<16x32xf32>
    %c128 = arith.constant 128 : index
    %c0_96 = arith.constant 0 : index
    %455 = vector.load %arg1[%c128, %c0_96] : memref<320x128xf32, #tpu.memory_space<vmem>>, vector<32x128xf32>
    %c160 = arith.constant 160 : index
    %c0_97 = arith.constant 0 : index
    %456 = vector.load %arg1[%c160, %c0_97] : memref<320x128xf32, #tpu.memory_space<vmem>>, vector<1x128xf32>
    %cst_98 = arith.constant dense<0.000000e+00> : vector<16x128xf32>
    %457 = tpu.matmul %454, %455, %cst_98 {dimension_numbers = #tpu.dot_dimension_numbers<[1], [0], [0], [1], [0, 0, 1, 1], [], []>} : vector<16x32xf32>, vector<32x128xf32>, vector<16x128xf32> -> vector<16x128xf32>
    %458 = vector.broadcast %456 : vector<1x128xf32> to vector<16x128xf32>
    %459 = arith.addf %457, %458 : vector<16x128xf32>
    %460 = vector.extract_strided_slice %459 {offsets = [0, 0], sizes = [8, 128], strides = [1, 1]} : vector<16x128xf32> to vector<8x128xf32>
    %461 = vector.extract_strided_slice %460 {offsets = [0, 0], sizes = [8, 32], strides = [1, 1]} : vector<8x128xf32> to vector<8x32xf32>
    %462 = vector.extract_strided_slice %460 {offsets = [0, 32], sizes = [8, 32], strides = [1, 1]} : vector<8x128xf32> to vector<8x32xf32>
    %463 = vector.extract_strided_slice %460 {offsets = [0, 64], sizes = [8, 32], strides = [1, 1]} : vector<8x128xf32> to vector<8x32xf32>
    %cst_99 = arith.constant dense<0.000000e+00> : vector<8x8xf32>
    %464 = tpu.matmul %461, %462, %cst_99 {dimension_numbers = #tpu.dot_dimension_numbers<[1], [1], [0], [0], [0, 0, 1, 0], [], []>} : vector<8x32xf32>, vector<8x32xf32>, vector<8x8xf32> -> vector<8x8xf32>
    %cst_100 = arith.constant 0.176776692 : f32
    %465 = vector.broadcast %cst_100 : f32 to vector<8x8xf32>
    %466 = arith.mulf %464, %465 : vector<8x8xf32>
    %cst_101 = arith.constant dense<0xFF800000> : vector<8xf32>
    %467 = vector.multi_reduction <maximumf>, %466, %cst_101 [1] : vector<8x8xf32> to vector<8xf32>
    %468 = vector.shape_cast %467 : vector<8xf32> to vector<8x1xf32>
    %469 = vector.broadcast %468 : vector<8x1xf32> to vector<8x8xf32>
    %470 = arith.subf %466, %469 : vector<8x8xf32>
    %471 = math.exp %470 : vector<8x8xf32>
    %cst_102 = arith.constant dense<0.000000e+00> : vector<8xf32>
    %472 = vector.multi_reduction <add>, %471, %cst_102 [1] : vector<8x8xf32> to vector<8xf32>
    %473 = vector.shape_cast %472 : vector<8xf32> to vector<8x1xf32>
    %474 = tpu.reciprocal %473 {approx = true} : vector<8x1xf32> -> vector<8x1xf32>
    %475 = vector.broadcast %474 : vector<8x1xf32> to vector<8x8xf32>
    %476 = arith.mulf %471, %475 : vector<8x8xf32>
    %cst_103 = arith.constant dense<0.000000e+00> : vector<8x32xf32>
    %477 = tpu.matmul %476, %463, %cst_103 {dimension_numbers = #tpu.dot_dimension_numbers<[1], [0], [0], [1], [0, 0, 1, 1], [], []>} : vector<8x8xf32>, vector<8x32xf32>, vector<8x32xf32> -> vector<8x32xf32>
    %478 = vector.extract_strided_slice %459 {offsets = [8, 0], sizes = [8, 128], strides = [1, 1]} : vector<16x128xf32> to vector<8x128xf32>
    %479 = vector.extract_strided_slice %478 {offsets = [0, 0], sizes = [8, 32], strides = [1, 1]} : vector<8x128xf32> to vector<8x32xf32>
    %480 = vector.extract_strided_slice %478 {offsets = [0, 32], sizes = [8, 32], strides = [1, 1]} : vector<8x128xf32> to vector<8x32xf32>
    %481 = vector.extract_strided_slice %478 {offsets = [0, 64], sizes = [8, 32], strides = [1, 1]} : vector<8x128xf32> to vector<8x32xf32>
    %cst_104 = arith.constant dense<0.000000e+00> : vector<8x8xf32>
    %482 = tpu.matmul %479, %480, %cst_104 {dimension_numbers = #tpu.dot_dimension_numbers<[1], [1], [0], [0], [0, 0, 1, 0], [], []>} : vector<8x32xf32>, vector<8x32xf32>, vector<8x8xf32> -> vector<8x8xf32>
    %cst_105 = arith.constant 0.176776692 : f32
    %483 = vector.broadcast %cst_105 : f32 to vector<8x8xf32>
    %484 = arith.mulf %482, %483 : vector<8x8xf32>
    %cst_106 = arith.constant dense<0xFF800000> : vector<8xf32>
    %485 = vector.multi_reduction <maximumf>, %484, %cst_106 [1] : vector<8x8xf32> to vector<8xf32>
    %486 = vector.shape_cast %485 : vector<8xf32> to vector<8x1xf32>
    %487 = vector.broadcast %486 : vector<8x1xf32> to vector<8x8xf32>
    %488 = arith.subf %484, %487 : vector<8x8xf32>
    %489 = math.exp %488 : vector<8x8xf32>
    %cst_107 = arith.constant dense<0.000000e+00> : vector<8xf32>
    %490 = vector.multi_reduction <add>, %489, %cst_107 [1] : vector<8x8xf32> to vector<8xf32>
    %491 = vector.shape_cast %490 : vector<8xf32> to vector<8x1xf32>
    %492 = tpu.reciprocal %491 {approx = true} : vector<8x1xf32> -> vector<8x1xf32>
    %493 = vector.broadcast %492 : vector<8x1xf32> to vector<8x8xf32>
    %494 = arith.mulf %489, %493 : vector<8x8xf32>
    %cst_108 = arith.constant dense<0.000000e+00> : vector<8x32xf32>
    %495 = tpu.matmul %494, %481, %cst_108 {dimension_numbers = #tpu.dot_dimension_numbers<[1], [0], [0], [1], [0, 0, 1, 1], [], []>} : vector<8x8xf32>, vector<8x32xf32>, vector<8x32xf32> -> vector<8x32xf32>
    %496 = tpu.concatenate %477, %495 in 0 : vector<8x32xf32>, vector<8x32xf32> -> vector<16x32xf32>
    %c168 = arith.constant 168 : index
    %c0_109 = arith.constant 0 : index
    %497 = vector.load %arg1[%c168, %c0_109] : memref<320x128xf32, #tpu.memory_space<vmem>>, vector<32x64xf32>
    %c200 = arith.constant 200 : index
    %c0_110 = arith.constant 0 : index
    %498 = vector.load %arg1[%c200, %c0_110] : memref<320x128xf32, #tpu.memory_space<vmem>>, vector<1x64xf32>
    %cst_111 = arith.constant dense<0.000000e+00> : vector<16x64xf32>
    %499 = tpu.matmul %496, %497, %cst_111 {dimension_numbers = #tpu.dot_dimension_numbers<[1], [0], [0], [1], [0, 0, 1, 1], [], []>} : vector<16x32xf32>, vector<32x64xf32>, vector<16x64xf32> -> vector<16x64xf32>
    %500 = vector.broadcast %498 : vector<1x64xf32> to vector<16x64xf32>
    %501 = arith.addf %499, %500 : vector<16x64xf32>
    %cst_112 = arith.constant 0.000000e+00 : f32
    %502 = vector.broadcast %cst_112 : f32 to vector<16x64xf32>
    %503 = arith.cmpf ogt, %501, %502 : vector<16x64xf32>
    %cst_113 = arith.constant 0.00999999977 : f32
    %504 = vector.broadcast %cst_113 : f32 to vector<16x64xf32>
    %505 = arith.mulf %504, %501 : vector<16x64xf32>
    %506 = arith.select %503, %501, %505 : vector<16x64xi1>, vector<16x64xf32>
    %c208 = arith.constant 208 : index
    %c0_114 = arith.constant 0 : index
    %507 = vector.load %arg1[%c208, %c0_114] : memref<320x128xf32, #tpu.memory_space<vmem>>, vector<64x32xf32>
    %c272 = arith.constant 272 : index
    %c0_115 = arith.constant 0 : index
    %508 = vector.load %arg1[%c272, %c0_115] : memref<320x128xf32, #tpu.memory_space<vmem>>, vector<1x32xf32>
    %cst_116 = arith.constant dense<0.000000e+00> : vector<16x32xf32>
    %509 = tpu.matmul %506, %507, %cst_116 {dimension_numbers = #tpu.dot_dimension_numbers<[1], [0], [0], [1], [0, 0, 1, 1], [], []>} : vector<16x64xf32>, vector<64x32xf32>, vector<16x32xf32> -> vector<16x32xf32>
    %510 = vector.broadcast %508 : vector<1x32xf32> to vector<16x32xf32>
    %511 = arith.addf %509, %510 : vector<16x32xf32>
    %cst_117 = arith.constant 0.000000e+00 : f32
    %512 = vector.broadcast %cst_117 : f32 to vector<16x32xf32>
    %513 = arith.cmpf ogt, %511, %512 : vector<16x32xf32>
    %cst_118 = arith.constant 0.00999999977 : f32
    %514 = vector.broadcast %cst_118 : f32 to vector<16x32xf32>
    %515 = arith.mulf %514, %511 : vector<16x32xf32>
    %516 = arith.select %513, %511, %515 : vector<16x32xi1>, vector<16x32xf32>
    %c280 = arith.constant 280 : index
    %c0_119 = arith.constant 0 : index
    %517 = vector.load %arg1[%c280, %c0_119] : memref<320x128xf32, #tpu.memory_space<vmem>>, vector<32x128xf32>
    %c312 = arith.constant 312 : index
    %c0_120 = arith.constant 0 : index
    %518 = vector.load %arg1[%c312, %c0_120] : memref<320x128xf32, #tpu.memory_space<vmem>>, vector<1x128xf32>
    %cst_121 = arith.constant dense<0.000000e+00> : vector<16x128xf32>
    %519 = tpu.matmul %516, %517, %cst_121 {dimension_numbers = #tpu.dot_dimension_numbers<[1], [0], [0], [1], [0, 0, 1, 1], [], []>} : vector<16x32xf32>, vector<32x128xf32>, vector<16x128xf32> -> vector<16x128xf32>
    %520 = vector.broadcast %518 : vector<1x128xf32> to vector<16x128xf32>
    %521 = arith.addf %519, %520 : vector<16x128xf32>
    %c0_122 = arith.constant 0 : index
    %c0_123 = arith.constant 0 : index
    %522 = vector.load %arg2[%c0_122, %c0_123] : memref<16x128xf32, #tpu.memory_space<vmem>>, vector<16x128xf32>
    tpu.vector_store %arg2[%c0_122, %c0_123], %521 {strides = array<i32>} : memref<16x128xf32, #tpu.memory_space<vmem>>, vector<16x128xf32>,
    return
  }
}

</mosaic_0001>

<bundles_post_ra>
// kernel: forward.1
= control target key start
LH: loop header
LB: loop body
LE: loop exit
PB: predicated region body
PF: predicated region fallthrough
CT: control target
= control target key end

     0   :  { %9 = vsyncpa [#allocation3], 0  ;;  %s3761_s0 = inlined_call_operand.vmem [shape: f32[16,16], index: 0, kind: input, shape index: {}]   ;;  %s3762_s1 = inlined_call_operand.hbm [shape: f32[320,128], index: 1, kind: input, shape index: {}]   ;;  %s3763_s2 = inlined_call_operand.vmem [shape: f32[16,128], index: 2, kind: output, shape index: {0}]   ;;  %s3764_s3 = inlined_call_operand.hbm [shape: f32[4,32], index: 3, kind: output, shape index: {1}]  }
   0x1   :  { %10 = vsyncpa [#allocation4], 0  ;;  %s3372_s12 = smov [#allocation2]   ;;  %s3324_s16 = scalar_lea.hbm %s3762_s1, 5120 }
   0x2   :  { %s18_s13 = sshll.u32 %s3372_s12, 4  ;;  %p3325_p0 = scmp.ne.s32.totalorder %s3762_s1, %s3324_s16  ;;  %s19_s13 = int_to_ptr.vmem [resolvable:$true] %s18_s13 }
   0x3   :  { %p3328_p1 = scmp.lt.u32.totalorder %s3324_s16, %s3762_s1 }
   0x5   :  { %p3330_p2 = pnand %p3328_p1, %p3325_p0 }
   0x7   :  { %3333 = shalt.err (!%p3330_p2)
}
   0x8   :  { %s3334_s21 = scalar_lea.vmem %s19_s13, 5120  ;;  %p3339_p4 = scmp.lt.s32.totalorder %s19_s13, %s19_s13 }
   0x9   :  { %p3335_p3 = scmp.ne.s32.totalorder %s19_s13, %s3334_s21  ;;  %p3340_p5 = scmp.lt.s32.totalorder %s3334_s21, %s3334_s21 }
   0xb   :  { %p3341_p6 = por %p3340_p5, %p3339_p4 }
   0xd   :  { %p3342_p7 = pnand %p3341_p6, %p3335_p3 }
   0xf   :  { %3345 = shalt.err (!%p3342_p7)
}
  0x10   :  { %s3373_s22 = smov 128   ;;  %s3374_s23 = smov 8  }
  0x11   :  { %24 = dma.hbm_to_vmem [thread:$0]  %s3762_s1, 5120, %s19_s13, [#allocation3], %s3373_s22, %s3373_s22, %s3374_s23  }
  0x12   :  { %3368 = dma.done.wait [#allocation3], 5120  }
  0x13   :  { %3369 = vsyncadd [#allocation3], 4294962176  ;;  %v3375_v0 = vmov 0.0|0.0   ;;  %vm3376_vm0 = vmmov 0   ;;  %v3377_v1 = vmov 0.0   ;;  %v32_v2 = vld [vmem:[#allocation2 + $0x10] sm:$0xff] }
  0x14   :  { %3099 = vmatprep.subr.bf16.mxu1 %v3375_v0  ;;  %2844 = vmatprep.mubr.msk.f32.mxu1 %vm3376_vm0, %v3377_v1  ;;  %v33_v3 = vld [vmem:[#allocation2 + $0x18] sm:$0xff]  ;;  %v30_v4 = vld [vmem:[#allocation2] sm:$0xff]  ;;  %vm42_vm1 = vcmask 130048   ;;  %v31_v6 = vld [vmem:[#allocation2 + $0x8] sm:$0xff]  ;;  %s3379_s29 = smov 96   ;;  %vm128_vm2 = vcmask 261120  }
  0x15   :  { %v3416_v5 = vpack.c.bf16 %v33_v3, %v32_v2  ;;  %v34_v7 = vld [vmem:[#allocation2 + $0x20] sm:$0xff]  ;;  %v35_v8 = vld [vmem:[#allocation2 + $0x28] sm:$0xff]  ;;  %v3095_v9 = vpack.c.bf16 %v31_v6, %v30_v4  ;;  %v2663_v14 = vld [vmem:[#allocation2 + $0x30] ss:$0 sm:$0xff]  ;;  %vm955_vm3 = vcmask 1041408   ;;  %vm957_vm4 = vcmask 1043456  }
  0x16   :  { %v28_v10 = vld [vmem:[%s3761_s0] sm:$0xff]  ;;  %v3422_v11 = vpack.c.bf16 %v35_v8, %v34_v7  ;;  %v29_v12 = vld [vmem:[%s3761_s0 + $0x8] sm:$0xff]  ;;  %v3446_v15 = vld [vmem:[#allocation2 + $0x31] ss:$0 sm:$0xff]  ;;  %s3378_s0 = smov 64   ;;  %vm959_vm5 = vcmask 1045504  }
  0x17   :  { %3101 = vmatpush3.bf16.msra.mxu1 %v3416_v5  ;;  %2833 = vmatprep.mubr.msk.f32.mxu0 %vm42_vm1, %v28_v10  ;;  %vm1901_vm6 = vcmask 1040384   ;;  %vm1904_vm7 = vcmask 1042432   ;;  %vm1907_vm8 = vcmask 1044480   ;;  %vm1910_vm9 = vcmask 1046528   ;;  %s3380_s30 = smov [#allocation5]  }
  0x18   :  { %3096 = vmatprep.subr.bf16.mxu0 %v3095_v9  ;;  %3102 = vmatprep.subr.bf16.mxu1 %v3375_v0  ;;  %vm2102_vm10 = vcmask 64512   ;;  %vm953_vm11 = vcmask 261126   ;;  %vm2464_vm14 = vcmask 523264   ;;  %s2652_s4 = sshll.u32 %s3380_s30, 4  ;;  %s2653_s4 = int_to_ptr.vmem [resolvable:$true] %s2652_s4 }
  0x19   :  { %3098 = vmatpush3.bf16.msra.mxu0 %v3095_v9  ;;  %s3346_s5 = scalar_lea.vmem %s2653_s4, 64  ;;  %p3351_p9 = scmp.lt.s32.totalorder %s2653_s4, %s2653_s4 }
  0x1a   :  { %3105 = vmatprep.subr.bf16.mxu0 %v3375_v0  ;;  %p3347_p8 = scmp.ne.s32.totalorder %s2653_s4, %s3346_s5  ;;  %p3352_p10 = scmp.lt.s32.totalorder %s3346_s5, %s3346_s5 }
  0x1b   :  { %3104 = vmatpush3.bf16.msra.mxu1 %v3422_v11 }
  0x1c   :  { %2834 = vmatmul.mubr.msk.f32.vlgmr.msra.gmra.mrb[0].mxu0 %vm42_vm1, %v29_v12  ;;  %3111 = vmatprep.subr.bf16.mxu1 %v3375_v0  ;;  %p3353_p11 = por %p3352_p10, %p3351_p9 }
  0x1d   :  { %3107 = vmatpush3.bf16.msra.mxu0 %v3416_v5  ;;  %2855 = vmatprep.mubr.msk.f32.mxu0 %vm3376_vm0, %v3377_v1 }
  0x1e   :  { %2845 = vmatmul.mubr.f32.vlgmr.msra.gmra.mrb[0].mxu1 %v3377_v1  ;;  %3108 = vmatprep.subr.bf16.mxu0 %v3375_v0  ;;  %p3354_p12 = pnand %p3353_p11, %p3347_p8 }
  0x1f   :  { %3113 = vmatpush3.bf16.msra.mxu1 %v3416_v5  ;;  %2866 = vmatprep.mubr.msk.f32.mxu1 %vm3376_vm0, %v3377_v1 }
  0x20   :  { %3114 = vmatprep.subr.bf16.mxu1 %v3375_v0 }
  0x21   :  { %3110 = vmatpush3.bf16.msra.mxu0 %v3422_v11 }
  0x22   :  { %3117 = vmatprep.subr.bf16.mxu0 %v3375_v0 }
  0x23   :  { %3116 = vmatpush3.bf16.msra.mxu1 %v3422_v11 }
  0x24   :  { %3123 = vmatprep.subr.bf16.mxu1 %v3375_v0 }
  0xef   :  { %v2835_v13 = vpop.f32.mrb[0].mxu0 }
  0xf0   :  { %v3448_v16 = vadd.f32 %v2835_v13, %v2663_v14  ;;  %v115_v17 = vpop.f32.mrb[1].mxu0 }
  0xf1   :  { %v198_v18 = vpop.f32.mrb[0].mxu1  ;;  %v3452_v21 = vadd.f32 %v2663_v14, %v115_v17 }
  0xf2   :  { %v199_v19 = vadd.f32 %v3446_v15, %v198_v18  ;;  %v2846_v20 = vpop.f32.mrb[1].mxu1 }
  0xf4   :  { %208 = vrot.lane.b32.xlu0 %v199_v19, %s3378_s0  ;;  %v202_v22 = vadd.f32 %v199_v19, %v3452_v21 }
  0xf6   :  { %v203_v23 = vmul.f32 0.5, %v202_v22 }
  0xf8   :  { %3252 = vtanh.f32 %v203_v23 }
 0x102   :  { %v3253_v24 = vpop.eup %3252 }
 0x103   :  { %v205_v25 = vmul.f32 0.5, %v3253_v24 }
 0x105   :  { %v206_v26 = vadd.f32 0.5, %v205_v25 }
 0x107   :  { %v218_v32 = vsub.f32 1.0, %v206_v26  ;;  %v224_v34 = vmul.f32 0.0, %v206_v26 }
 0x166   :  { %v209_v27 = vpop.permute.xlu0 %208 }
 0x167   :  { %v211_v28 = vmul.f32 %v209_v27, %v206_v26 }
 0x169   :  { %213 = vrot.lane.b32.xlu0 %v211_v28, %s3378_s0 }
 0x1db   :  { %v214_v29 = vpop.permute.xlu0 %213 }
 0x1dc   :  { %v216_v30 = vadd.f32 %v214_v29, %v3452_v21 }
 0x1de   :  { %3254 = vtanh.f32 %v216_v30 }
 0x1e8   :  { %v3255_v31 = vpop.eup %3254 }
 0x1e9   :  { %220 = vrot.lane.b32.xlu1 %v3255_v31, %s3379_s29 }
 0x25b   :  { %v221_v33 = vpop.permute.xlu1 %220 }
 0x25c   :  { %v223_v35 = vmul.f32 %v221_v33, %v218_v32 }
 0x25e   :  { %v3458_v36 = vadd.f32 %v224_v34, %v223_v35 }
 0x260   :  { %227 = vrot.lane.b32.xlu1 %v3458_v36, %s3379_s29  ;;  %v325_v53 = vrot.slane %v3458_v36, 6 }
 0x2d2   :  { %v228_v37 = vpop.permute.xlu1 %227 }
 0x2d3   :  { %2856 = vmatmul.mubr.msk.f32.vlgmr.msra.gmra.mrb[2].mxu0 %vm128_vm2, %v228_v37 }
 0x2d4   :  { %3119 = vmatpush3.bf16.msra.mxu0 %v3416_v5  ;;  %2877 = vmatprep.mubr.msk.f32.mxu0 %vm3376_vm0, %v3377_v1 }
 0x2d5   :  { %3120 = vmatprep.subr.bf16.mxu0 %v3375_v0 }
 0x2d8   :  { %3122 = vmatpush3.bf16.msra.mxu0 %v3422_v11 }
 0x2d9   :  { %3129 = vmatprep.subr.bf16.mxu0 %v3375_v0 }
 0x3a6   :  { %v297_v38 = vpop.f32.mrb[2].mxu0 }
 0x3a7   :  { %v298_v39 = vadd.f32 %v3446_v15, %v297_v38  ;;  %v2857_v40 = vpop.f32.mrb[3].mxu0 }
 0x3a9   :  { %v302_v41 = vrot.slane %v298_v39, 6 }
 0x3ab   :  { %309 = vrot.lane.b32.xlu0 %v302_v41, %s3378_s0  ;;  %v304_v42 = vadd.f32 %v302_v41, %v3452_v21 }
 0x3ad   :  { %v305_v43 = vmul.f32 0.5, %v304_v42 }
 0x3af   :  { %3256 = vtanh.f32 %v305_v43 }
 0x3b9   :  { %v3257_v44 = vpop.eup %3256 }
 0x3ba   :  { %v307_v45 = vmul.f32 0.5, %v3257_v44 }
 0x3bc   :  { %v308_v46 = vadd.f32 0.5, %v307_v45 }
 0x3be   :  { %v319_v52 = vsub.f32 1.0, %v308_v46  ;;  %v327_v56 = vmul.f32 %v325_v53, %v308_v46 }
 0x41d   :  { %v310_v47 = vpop.permute.xlu0 %309 }
 0x41e   :  { %v312_v48 = vmul.f32 %v310_v47, %v308_v46 }
 0x420   :  { %314 = vrot.lane.b32.xlu1 %v312_v48, %s3378_s0 }
 0x492   :  { %v315_v49 = vpop.permute.xlu1 %314 }
 0x493   :  { %v317_v50 = vadd.f32 %v315_v49, %v3452_v21 }
 0x495   :  { %3258 = vtanh.f32 %v317_v50 }
 0x49f   :  { %v3259_v51 = vpop.eup %3258 }
 0x4a0   :  { %321 = vrot.lane.b32.xlu0 %v3259_v51, %s3379_s29 }
 0x512   :  { %v322_v54 = vpop.permute.xlu0 %321 }
 0x513   :  { %v324_v55 = vmul.f32 %v322_v54, %v319_v52 }
 0x515   :  { %v328_v57 = vadd.f32 %v327_v56, %v324_v55 }
 0x517   :  { %v330_v58 = vrot.slane %v328_v57, 2  ;;  %v429_v17 = vrot.slane %v328_v57, 6  ;;  %v956_v23 = vsel %vm955_vm3, %v3458_v36, %v328_v57 }
 0x519   :  { %331 = vrot.lane.b32.xlu1 %v330_v58, %s3379_s29 }
 0x58b   :  { %v332_v59 = vpop.permute.xlu1 %331 }
 0x58c   :  { %2867 = vmatmul.mubr.msk.f32.vlgmr.msra.gmra.mrb[2].mxu1 %vm128_vm2, %v332_v59 }
 0x58d   :  { %3125 = vmatpush3.bf16.msra.mxu1 %v3416_v5  ;;  %2888 = vmatprep.mubr.msk.f32.mxu1 %vm3376_vm0, %v3377_v1 }
 0x58e   :  { %3126 = vmatprep.subr.bf16.mxu1 %v3375_v0 }
 0x591   :  { %3128 = vmatpush3.bf16.msra.mxu1 %v3422_v11 }
 0x592   :  { %3135 = vmatprep.subr.bf16.mxu1 %v3375_v0 }
 0x65f   :  { %v401_v60 = vpop.f32.mrb[2].mxu1 }
 0x660   :  { %v402_v61 = vadd.f32 %v3446_v15, %v401_v60  ;;  %v2868_v62 = vpop.f32.mrb[3].mxu1 }
 0x662   :  { %v406_v63 = vrot.slane %v402_v61, 4 }
 0x664   :  { %413 = vrot.lane.b32.xlu0 %v406_v63, %s3378_s0  ;;  %v408_v2 = vadd.f32 %v406_v63, %v3452_v21 }
 0x666   :  { %v409_v3 = vmul.f32 0.5, %v408_v2 }
 0x668   :  { %3260 = vtanh.f32 %v409_v3 }
 0x672   :  { %v3261_v4 = vpop.eup %3260 }
 0x673   :  { %v411_v6 = vmul.f32 0.5, %v3261_v4 }
 0x675   :  { %v412_v7 = vadd.f32 0.5, %v411_v6 }
 0x677   :  { %v423_v14 = vsub.f32 1.0, %v412_v7  ;;  %v431_v19 = vmul.f32 %v429_v17, %v412_v7 }
 0x6d6   :  { %v414_v8 = vpop.permute.xlu0 %413 }
 0x6d7   :  { %v416_v9 = vmul.f32 %v414_v8, %v412_v7 }
 0x6d9   :  { %418 = vrot.lane.b32.xlu1 %v416_v9, %s3378_s0 }
 0x74b   :  { %v419_v10 = vpop.permute.xlu1 %418 }
 0x74c   :  { %v421_v12 = vadd.f32 %v419_v10, %v3452_v21 }
 0x74e   :  { %3262 = vtanh.f32 %v421_v12 }
 0x758   :  { %v3263_v13 = vpop.eup %3262 }
 0x759   :  { %425 = vrot.lane.b32.xlu0 %v3263_v13, %s3379_s29 }
 0x7cb   :  { %v426_v18 = vpop.permute.xlu0 %425 }
 0x7cc   :  { %v428_v20 = vmul.f32 %v426_v18, %v423_v14 }
 0x7ce   :  { %v432_v22 = vadd.f32 %v431_v19, %v428_v20 }
 0x7d0   :  { %v434_v24 = vrot.slane %v432_v22, 4  ;;  %v958_v25 = vsel %vm957_vm4, %v956_v23, %v432_v22  ;;  %v533_v42 = vrot.slane %v432_v22, 6 }
 0x7d2   :  { %435 = vrot.lane.b32.xlu1 %v434_v24, %s3379_s29 }
 0x844   :  { %v436_v26 = vpop.permute.xlu1 %435 }
 0x845   :  { %2878 = vmatmul.mubr.msk.f32.vlgmr.msra.gmra.mrb[4].mxu0 %vm128_vm2, %v436_v26 }
 0x846   :  { %3131 = vmatpush3.bf16.msra.mxu0 %v3416_v5  ;;  %2899 = vmatprep.mubr.msk.f32.mxu0 %vm3376_vm0, %v3377_v1 }
 0x847   :  { %3132 = vmatprep.subr.bf16.mxu0 %v3375_v0 }
 0x84a   :  { %3134 = vmatpush3.bf16.msra.mxu0 %v3422_v11 }
 0x84b   :  { %3141 = vmatprep.subr.bf16.mxu0 %v3375_v0 }
 0x918   :  { %v505_v27 = vpop.f32.mrb[4].mxu0 }
 0x919   :  { %v506_v28 = vadd.f32 %v3446_v15, %v505_v27  ;;  %v2879_v29 = vpop.f32.mrb[5].mxu0 }
 0x91b   :  { %v510_v30 = vrot.slane %v506_v28, 2 }
 0x91d   :  { %517 = vrot.lane.b32.xlu0 %v510_v30, %s3378_s0  ;;  %v512_v31 = vadd.f32 %v510_v30, %v3452_v21 }
 0x91f   :  { %v513_v32 = vmul.f32 0.5, %v512_v31 }
 0x921   :  { %3264 = vtanh.f32 %v513_v32 }
 0x92b   :  { %v3265_v33 = vpop.eup %3264 }
 0x92c   :  { %v515_v34 = vmul.f32 0.5, %v3265_v33 }
 0x92e   :  { %v516_v35 = vadd.f32 0.5, %v515_v34 }
 0x930   :  { %v527_v41 = vsub.f32 1.0, %v516_v35  ;;  %v535_v44 = vmul.f32 %v533_v42, %v516_v35 }
 0x98f   :  { %v518_v36 = vpop.permute.xlu0 %517 }
 0x990   :  { %v520_v37 = vmul.f32 %v518_v36, %v516_v35 }
 0x992   :  { %522 = vrot.lane.b32.xlu1 %v520_v37, %s3378_s0 }
 0xa04   :  { %v523_v38 = vpop.permute.xlu1 %522 }
 0xa05   :  { %v525_v39 = vadd.f32 %v523_v38, %v3452_v21 }
 0xa07   :  { %3266 = vtanh.f32 %v525_v39 }
 0xa11   :  { %v3267_v40 = vpop.eup %3266 }
 0xa12   :  { %529 = vrot.lane.b32.xlu0 %v3267_v40, %s3379_s29 }
 0xa84   :  { %v530_v43 = vpop.permute.xlu0 %529 }
 0xa85   :  { %v532_v45 = vmul.f32 %v530_v43, %v527_v41 }
 0xa87   :  { %v536_v46 = vadd.f32 %v535_v44, %v532_v45 }
 0xa89   :  { %v538_v47 = vrot.slane %v536_v46, 6  ;;  %v3508_v48 = vsel %vm959_vm5, %v958_v25, %v536_v46 }
 0xa8b   :  { %539 = vrot.lane.b32.xlu1 %v538_v47, %s3379_s29 }
 0xafd   :  { %v540_v49 = vpop.permute.xlu1 %539 }
 0xafe   :  { %2889 = vmatmul.mubr.msk.f32.vlgmr.msra.gmra.mrb[4].mxu1 %vm128_vm2, %v540_v49 }
 0xaff   :  { %3137 = vmatpush3.bf16.msra.mxu1 %v3416_v5  ;;  %2910 = vmatprep.mubr.msk.f32.mxu1 %vm3376_vm0, %v3377_v1 }
 0xb00   :  { %3138 = vmatprep.subr.bf16.mxu1 %v3375_v0 }
 0xb03   :  { %3140 = vmatpush3.bf16.msra.mxu1 %v3422_v11 }
 0xbd1   :  { %v609_v21 = vpop.f32.mrb[4].mxu1 }
 0xbd2   :  { %v610_v50 = vadd.f32 %v3446_v15, %v609_v21  ;;  %v2890_v51 = vpop.f32.mrb[5].mxu1 }
 0xbd4   :  { %619 = vrot.lane.b32.xlu0 %v610_v50, %s3378_s0  ;;  %v613_v52 = vadd.f32 %v610_v50, %v3448_v16 }
 0xbd6   :  { %v614_v53 = vmul.f32 0.5, %v613_v52 }
 0xbd8   :  { %3268 = vtanh.f32 %v614_v53 }
 0xbe2   :  { %v3269_v54 = vpop.eup %3268 }
 0xbe3   :  { %v616_v55 = vmul.f32 0.5, %v3269_v54 }
 0xbe5   :  { %v617_v56 = vadd.f32 0.5, %v616_v55 }
 0xbe7   :  { %v629_v62 = vsub.f32 1.0, %v617_v56  ;;  %v636_v2 = vmul.f32 %v617_v56, %v538_v47 }
 0xc46   :  { %v620_v57 = vpop.permute.xlu0 %619 }
 0xc47   :  { %v622_v58 = vmul.f32 %v620_v57, %v617_v56 }
 0xc49   :  { %624 = vrot.lane.b32.xlu1 %v622_v58, %s3378_s0 }
 0xcbb   :  { %v625_v59 = vpop.permute.xlu1 %624 }
 0xcbc   :  { %v627_v60 = vadd.f32 %v625_v59, %v3448_v16 }
 0xcbe   :  { %3270 = vtanh.f32 %v627_v60 }
 0xcc8   :  { %v3271_v61 = vpop.eup %3270 }
 0xcc9   :  { %631 = vrot.lane.b32.xlu0 %v3271_v61, %s3379_s29 }
 0xd3b   :  { %v632_v63 = vpop.permute.xlu0 %631 }
 0xd3c   :  { %v634_v3 = vmul.f32 %v632_v63, %v629_v62 }
 0xd3e   :  { %v3523_v4 = vadd.f32 %v636_v2, %v634_v3 }
 0xd40   :  { %639 = vrot.lane.b32.xlu1 %v3523_v4, %s3379_s29  ;;  %v737_v24 = vrot.slane %v3523_v4, 6 }
 0xdb2   :  { %v640_v6 = vpop.permute.xlu1 %639 }
 0xdb3   :  { %2900 = vmatmul.mubr.msk.f32.vlgmr.msra.gmra.mrb[6].mxu0 %vm128_vm2, %v640_v6 }
 0xdb4   :  { %3143 = vmatpush3.bf16.msra.mxu0 %v3416_v5  ;;  %2921 = vmatprep.mubr.msk.f32.mxu0 %vm3376_vm0, %v3377_v1 }
 0xdb5   :  { %3144 = vmatprep.subr.bf16.mxu0 %v3375_v0 }
 0xdb8   :  { %3146 = vmatpush3.bf16.msra.mxu0 %v3422_v11 }
 0xdb9   :  { %3155 = vmatprep.subr.bf16.mxu0 %v3375_v0 }
 0xe86   :  { %v709_v7 = vpop.f32.mrb[6].mxu0 }
 0xe87   :  { %v710_v8 = vadd.f32 %v3446_v15, %v709_v7  ;;  %v2901_v9 = vpop.f32.mrb[7].mxu0  ;;  %v968_v7 = vld [vmem:[#allocation2 + $0x58] sm:$0xff] }
 0xe88   :  { %v970_v9 = vld [vmem:[#allocation2 + $0x68] sm:$0xff] }
 0xe89   :  { %v714_v10 = vrot.slane %v710_v8, 6  ;;  %v969_v8 = vld [vmem:[#allocation2 + $0x60] sm:$0xff] }
 0xe8b   :  { %721 = vrot.lane.b32.xlu0 %v714_v10, %s3378_s0  ;;  %v716_v12 = vadd.f32 %v714_v10, %v3448_v16  ;;  %v3564_v10 = vpack.c.bf16 %v969_v8, %v968_v7 }
 0xe8d   :  { %v717_v13 = vmul.f32 0.5, %v716_v12  ;;  %v971_v12 = vld [vmem:[#allocation2 + $0x70] sm:$0xff] }
 0xe8f   :  { %3272 = vtanh.f32 %v717_v13  ;;  %v964_v13 = vld [vmem:[#allocation2 + $0x38] sm:$0xff] }
 0xe99   :  { %v3273_v5 = vpop.eup %3272 }
 0xe9a   :  { %v719_v14 = vmul.f32 0.5, %v3273_v5  ;;  %v965_v5 = vld [vmem:[#allocation2 + $0x40] sm:$0xff] }
 0xe9c   :  { %v720_v17 = vadd.f32 0.5, %v719_v14  ;;  %v3147_v14 = vpack.c.bf16 %v965_v5, %v964_v13 }
 0xe9e   :  { %v731_v23 = vsub.f32 1.0, %v720_v17  ;;  %v739_v27 = vmul.f32 %v737_v24, %v720_v17  ;;  %3148 = vmatprep.subr.bf16.mxu1 %v3147_v14 }
 0xefd   :  { %v722_v18 = vpop.permute.xlu0 %721 }
 0xefe   :  { %v724_v19 = vmul.f32 %v722_v18, %v720_v17  ;;  %v966_v17 = vld [vmem:[#allocation2 + $0x48] sm:$0xff]  ;;  %v967_v18 = vld [vmem:[#allocation2 + $0x50] sm:$0xff] }
 0xf00   :  { %726 = vrot.lane.b32.xlu1 %v724_v19, %s3378_s0 }
 0xf72   :  { %v727_v11 = vpop.permute.xlu1 %726 }
 0xf73   :  { %v729_v20 = vadd.f32 %v727_v11, %v3448_v16 }
 0xf75   :  { %3274 = vtanh.f32 %v729_v20 }
 0xf7f   :  { %v3275_v22 = vpop.eup %3274 }
 0xf80   :  { %733 = vrot.lane.b32.xlu0 %v3275_v22, %s3379_s29 }
 0xff2   :  { %v734_v25 = vpop.permute.xlu0 %733 }
 0xff3   :  { %v736_v26 = vmul.f32 %v734_v25, %v731_v23 }
 0xff5   :  { %v740_v28 = vadd.f32 %v739_v27, %v736_v26  ;;  %v3586_v27 = vld [vmem:[#allocation2 + $0x79] ss:$0 sm:$0xff] }
 0xff7   :  { %v742_v29 = vrot.slane %v740_v28, 2  ;;  %v841_v46 = vrot.slane %v740_v28, 6  ;;  %v961_v51 = vsel %vm955_vm3, %v3523_v4, %v740_v28 }
 0xff9   :  { %743 = vrot.lane.b32.xlu1 %v742_v29, %s3379_s29 }
0x106b   :  { %v744_v30 = vpop.permute.xlu1 %743 }
0x106c   :  { %2911 = vmatmul.mubr.msk.f32.vlgmr.msra.gmra.mrb[6].mxu1 %vm128_vm2, %v744_v30 }
0x106d   :  { %3150 = vmatpush3.bf16.msra.mxu1 %v3147_v14 }
0x113f   :  { %v813_v31 = vpop.f32.mrb[6].mxu1 }
0x1140   :  { %v814_v32 = vadd.f32 %v3446_v15, %v813_v31  ;;  %v2912_v33 = vpop.f32.mrb[7].mxu1 }
0x1142   :  { %v818_v34 = vrot.slane %v814_v32, 4  ;;  %v2674_v32 = vld [vmem:[#allocation2 + $0x78] ss:$0 sm:$0xff] }
0x1144   :  { %825 = vrot.lane.b32.xlu0 %v818_v34, %s3378_s0  ;;  %v820_v35 = vadd.f32 %v818_v34, %v3448_v16 }
0x1146   :  { %v821_v36 = vmul.f32 0.5, %v820_v35 }
0x1148   :  { %3276 = vtanh.f32 %v821_v36 }
0x1152   :  { %v3277_v37 = vpop.eup %3276 }
0x1153   :  { %v823_v38 = vmul.f32 0.5, %v3277_v37 }
0x1155   :  { %v824_v39 = vadd.f32 0.5, %v823_v38 }
0x1157   :  { %v835_v45 = vsub.f32 1.0, %v824_v39  ;;  %v843_v49 = vmul.f32 %v841_v46, %v824_v39 }
0x11b6   :  { %v826_v40 = vpop.permute.xlu0 %825 }
0x11b7   :  { %v828_v41 = vmul.f32 %v826_v40, %v824_v39 }
0x11b9   :  { %830 = vrot.lane.b32.xlu1 %v828_v41, %s3378_s0 }
0x122b   :  { %v831_v42 = vpop.permute.xlu1 %830 }
0x122c   :  { %v833_v43 = vadd.f32 %v831_v42, %v3448_v16 }
0x122e   :  { %3278 = vtanh.f32 %v833_v43 }
0x1238   :  { %v3279_v44 = vpop.eup %3278 }
0x1239   :  { %837 = vrot.lane.b32.xlu0 %v3279_v44, %s3379_s29 }
0x12ab   :  { %v838_v47 = vpop.permute.xlu0 %837 }
0x12ac   :  { %v840_v21 = vmul.f32 %v838_v47, %v835_v45 }
0x12ae   :  { %v844_v50 = vadd.f32 %v843_v49, %v840_v21 }
0x12b0   :  { %v846_v52 = vrot.slane %v844_v50, 4  ;;  %v962_v53 = vsel %vm957_vm4, %v961_v51, %v844_v50  ;;  %v945_v20 = vrot.slane %v844_v50, 6 }
0x12b2   :  { %847 = vrot.lane.b32.xlu1 %v846_v52, %s3379_s29 }
0x1324   :  { %v848_v54 = vpop.permute.xlu1 %847 }
0x1325   :  { %2922 = vmatmul.mubr.msk.f32.vlgmr.msra.gmra.mrb[8].mxu0 %vm128_vm2, %v848_v54 }
0x1326   :  { %2943 = vmatprep.mubr.msk.f32.mxu0 %vm3376_vm0, %v3377_v1  ;;  %3157 = vmatpush3.bf16.msra.mxu0 %v3564_v10 }
0x1327   :  { %3158 = vmatprep.subr.bf16.mxu0 %v3375_v0 }
0x13f8   :  { %v917_v55 = vpop.f32.mrb[8].mxu0 }
0x13f9   :  { %v918_v56 = vadd.f32 %v3446_v15, %v917_v55  ;;  %v2923_v57 = vpop.f32.mrb[9].mxu0 }
0x13fb   :  { %v922_v58 = vrot.slane %v918_v56, 2 }
0x13fd   :  { %929 = vrot.lane.b32.xlu0 %v922_v58, %s3378_s0  ;;  %v924_v59 = vadd.f32 %v922_v58, %v3448_v16 }
0x13ff   :  { %v925_v60 = vmul.f32 0.5, %v924_v59 }
0x1401   :  { %3280 = vtanh.f32 %v925_v60 }
0x140b   :  { %v3281_v61 = vpop.eup %3280 }
0x140c   :  { %v927_v62 = vmul.f32 0.5, %v3281_v61 }
0x140e   :  { %v928_v63 = vadd.f32 0.5, %v927_v62 }
0x1410   :  { %v939_v11 = vsub.f32 1.0, %v928_v63  ;;  %v947_v23 = vmul.f32 %v945_v20, %v928_v63 }
0x146f   :  { %v930_v2 = vpop.permute.xlu0 %929 }
0x1470   :  { %v932_v3 = vmul.f32 %v930_v2, %v928_v63 }
0x1472   :  { %934 = vrot.lane.b32.xlu1 %v932_v3, %s3378_s0 }
0x1476   :  { %980 = vrot.lane.b32.xlu1 %v3508_v48, %s3379_s29  ;;  %v3567_v48 = vpack.c.bf16 %v971_v12, %v970_v9 }
0x1478   :  { %3160 = vmatpush3.bf16.msra.mxu0 %v3567_v48 }
0x1479   :  { %3167 = vmatprep.subr.bf16.mxu0 %v3375_v0 }
0x147b   :  { %2944 = vmatmul.mubr.f32.vlgmr.msra.gmra.mrb[10].mxu0 %v3377_v1 }
0x147c   :  { %3169 = vmatpush3.bf16.msra.mxu0 %v3564_v10  ;;  %2965 = vmatprep.mubr.msk.f32.mxu0 %vm3376_vm0, %v3377_v1 }
0x147d   :  { %3170 = vmatprep.subr.bf16.mxu0 %v3375_v0 }
0x1480   :  { %3172 = vmatpush3.bf16.msra.mxu0 %v3567_v48 }
0x1481   :  { %3179 = vmatprep.subr.bf16.mxu0 %v3375_v0 }
0x14e4   :  { %v935_v4 = vpop.permute.xlu1 %934 }
0x14e5   :  { %v937_v15 = vadd.f32 %v935_v4, %v3448_v16  ;;  %v3151_v16 = vpack.c.bf16 %v967_v18, %v966_v17 }
0x14e7   :  { %3282 = vtanh.f32 %v937_v15  ;;  %3152 = vmatprep.subr.bf16.mxu1 %v3151_v16 }
0x14e8   :  { %v981_v6 = vpop.permute.xlu1 %980  ;;  %3154 = vmatpush3.bf16.msra.mxu1 %v3151_v16 }
0x14e9   :  { %2932 = vmatprep.mubr.msk.f32.mxu1 %vm128_vm2, %v981_v6  ;;  %3161 = vmatprep.subr.bf16.mxu1 %v3375_v0 }
0x14f1   :  { %v3283_v19 = vpop.eup %3282 }
0x14f2   :  { %941 = vrot.lane.b32.xlu0 %v3283_v19, %s3379_s29 }
0x154e   :  { %v1133_v28 = vpop.f32.mrb[10].mxu0 }
0x154f   :  { %v1134_v29 = vadd.f32 %v3586_v27, %v1133_v28  ;;  %v2945_v30 = vpop.f32.mrb[11].mxu0 }
0x1551   :  { %1143 = vrot.lane.b32.xlu1 %v1134_v29, %s3378_s0 }
0x1564   :  { %v942_v22 = vpop.permute.xlu0 %941 }
0x1565   :  { %v944_v24 = vmul.f32 %v942_v22, %v939_v11 }
0x1567   :  { %v3581_v25 = vadd.f32 %v947_v23, %v944_v24 }
0x1569   :  { %v963_v26 = vsel %vm959_vm5, %v962_v53, %v3581_v25 }
0x156a   :  { %982 = vrot.lane.b32.xlu0 %v963_v26, %s3379_s29 }
0x15c3   :  { %v1144_v41 = vpop.permute.xlu1 %1143 }
0x15dc   :  { %v983_v31 = vpop.permute.xlu0 %982 }
0x15dd   :  { %2933 = vmatmul.mubr.msk.f32.vlgmr.msra.gmra.mrb[8].mxu1 %vm128_vm2, %v983_v31 }
0x15de   :  { %3163 = vmatpush3.bf16.msra.mxu1 %v3564_v10  ;;  %2954 = vmatprep.mubr.msk.f32.mxu1 %vm3376_vm0, %v3377_v1 }
0x15df   :  { %3164 = vmatprep.subr.bf16.mxu1 %v3375_v0 }
0x15e2   :  { %3166 = vmatpush3.bf16.msra.mxu1 %v3567_v48 }
0x15e3   :  { %3173 = vmatprep.subr.bf16.mxu1 %v3375_v0 }
0x16b0   :  { %v2934_v33 = vpop.f32.mrb[8].mxu1 }
0x16b1   :  { %v3597_v34 = vadd.f32 %v2934_v33, %v2674_v32  ;;  %v1054_v35 = vpop.f32.mrb[9].mxu1 }
0x16b2   :  { %v3599_v36 = vadd.f32 %v2674_v32, %v1054_v35 }
0x16b4   :  { %v1137_v37 = vadd.f32 %v1134_v29, %v3599_v36 }
0x16b6   :  { %v1138_v38 = vmul.f32 0.5, %v1137_v37 }
0x16b8   :  { %3284 = vtanh.f32 %v1138_v38 }
0x16c2   :  { %v3285_v39 = vpop.eup %3284 }
0x16c3   :  { %v1140_v40 = vmul.f32 0.5, %v3285_v39 }
0x16c5   :  { %v1141_v42 = vadd.f32 0.5, %v1140_v40 }
0x16c7   :  { %v1146_v43 = vmul.f32 %v1144_v41, %v1141_v42  ;;  %v1153_v47 = vsub.f32 1.0, %v1141_v42  ;;  %v1159_v21 = vmul.f32 0.0, %v1141_v42 }
0x16c9   :  { %1148 = vrot.lane.b32.xlu0 %v1146_v43, %s3378_s0 }
0x173b   :  { %v1149_v44 = vpop.permute.xlu0 %1148 }
0x173c   :  { %v1151_v45 = vadd.f32 %v1149_v44, %v3599_v36 }
0x173e   :  { %3286 = vtanh.f32 %v1151_v45 }
0x1748   :  { %v3287_v46 = vpop.eup %3286 }
0x1749   :  { %1155 = vrot.lane.b32.xlu1 %v3287_v46, %s3379_s29 }
0x17bb   :  { %v1156_v49 = vpop.permute.xlu1 %1155 }
0x17bc   :  { %v1158_v50 = vmul.f32 %v1156_v49, %v1153_v47 }
0x17be   :  { %v3605_v51 = vadd.f32 %v1159_v21, %v1158_v50 }
0x17c0   :  { %1162 = vrot.lane.b32.xlu0 %v3605_v51, %s3379_s29  ;;  %v1260_v6 = vrot.slane %v3605_v51, 6  ;;  %v1912_v40 = vrot.slane %v3605_v51, 1 }
0x1832   :  { %v1163_v52 = vpop.permute.xlu0 %1162 }
0x1833   :  { %2955 = vmatmul.mubr.msk.f32.vlgmr.msra.gmra.mrb[10].mxu1 %vm128_vm2, %v1163_v52 }
0x1834   :  { %3175 = vmatpush3.bf16.msra.mxu1 %v3564_v10  ;;  %2976 = vmatprep.mubr.msk.f32.mxu1 %vm3376_vm0, %v3377_v1 }
0x1835   :  { %3176 = vmatprep.subr.bf16.mxu1 %v3375_v0 }
0x1838   :  { %3178 = vmatpush3.bf16.msra.mxu1 %v3567_v48 }
0x1839   :  { %3185 = vmatprep.subr.bf16.mxu1 %v3375_v0 }
0x1906   :  { %v1232_v53 = vpop.f32.mrb[10].mxu1 }
0x1907   :  { %v1233_v54 = vadd.f32 %v3586_v27, %v1232_v53  ;;  %v2956_v55 = vpop.f32.mrb[11].mxu1 }
0x1909   :  { %v1237_v56 = vrot.slane %v1233_v54, 6 }
0x190b   :  { %1244 = vrot.lane.b32.xlu1 %v1237_v56, %s3378_s0  ;;  %v1239_v57 = vadd.f32 %v1237_v56, %v3599_v36 }
0x190d   :  { %v1240_v58 = vmul.f32 0.5, %v1239_v57 }
0x190f   :  { %3288 = vtanh.f32 %v1240_v58 }
0x1919   :  { %v3289_v59 = vpop.eup %3288 }
0x191a   :  { %v1242_v60 = vmul.f32 0.5, %v3289_v59 }
0x191c   :  { %v1243_v61 = vadd.f32 0.5, %v1242_v60 }
0x191e   :  { %v1254_v15 = vsub.f32 1.0, %v1243_v61  ;;  %v1262_v9 = vmul.f32 %v1260_v6, %v1243_v61 }
0x197d   :  { %v1245_v62 = vpop.permute.xlu1 %1244 }
0x197e   :  { %v1247_v63 = vmul.f32 %v1245_v62, %v1243_v61 }
0x1980   :  { %1249 = vrot.lane.b32.xlu0 %v1247_v63, %s3378_s0 }
0x19f2   :  { %v1250_v2 = vpop.permute.xlu0 %1249 }
0x19f3   :  { %v1252_v3 = vadd.f32 %v1250_v2, %v3599_v36 }
0x19f5   :  { %3290 = vtanh.f32 %v1252_v3 }
0x19ff   :  { %v3291_v4 = vpop.eup %3290 }
0x1a00   :  { %1256 = vrot.lane.b32.xlu1 %v3291_v4, %s3379_s29 }
0x1a72   :  { %v1257_v7 = vpop.permute.xlu1 %1256 }
0x1a73   :  { %v1259_v8 = vmul.f32 %v1257_v7, %v1254_v15 }
0x1a75   :  { %v1263_v12 = vadd.f32 %v1262_v9, %v1259_v8 }
0x1a77   :  { %v1265_v13 = vrot.slane %v1263_v12, 2  ;;  %v1364_v32 = vrot.slane %v1263_v12, 6  ;;  %v1889_v38 = vrot.slane %v1263_v12, 1 }
0x1a79   :  { %1266 = vrot.lane.b32.xlu0 %v1265_v13, %s3379_s29  ;;  %v1902_v44 = vsel %vm1901_vm6, %v3605_v51, %v1889_v38  ;;  %v1923_v45 = vsel %vm1901_vm6, %v1912_v40, %v1265_v13 }
0x1aeb   :  { %v1267_v5 = vpop.permute.xlu0 %1266 }
0x1aec   :  { %2966 = vmatmul.mubr.msk.f32.vlgmr.msra.gmra.mrb[12].mxu0 %vm128_vm2, %v1267_v5 }
0x1aed   :  { %3181 = vmatpush3.bf16.msra.mxu0 %v3564_v10  ;;  %2987 = vmatprep.mubr.msk.f32.mxu0 %vm3376_vm0, %v3377_v1 }
0x1aee   :  { %3182 = vmatprep.subr.bf16.mxu0 %v3375_v0 }
0x1af1   :  { %3184 = vmatpush3.bf16.msra.mxu0 %v3567_v48 }
0x1af2   :  { %3191 = vmatprep.subr.bf16.mxu0 %v3375_v0 }
0x1bbf   :  { %v1336_v14 = vpop.f32.mrb[12].mxu0 }
0x1bc0   :  { %v1337_v17 = vadd.f32 %v3586_v27, %v1336_v14  ;;  %v2967_v18 = vpop.f32.mrb[13].mxu0 }
0x1bc2   :  { %v1341_v16 = vrot.slane %v1337_v17, 4 }
0x1bc4   :  { %1348 = vrot.lane.b32.xlu1 %v1341_v16, %s3378_s0  ;;  %v1343_v19 = vadd.f32 %v1341_v16, %v3599_v36 }
0x1bc6   :  { %v1344_v11 = vmul.f32 0.5, %v1343_v19 }
0x1bc8   :  { %3292 = vtanh.f32 %v1344_v11 }
0x1bd2   :  { %v3293_v20 = vpop.eup %3292 }
0x1bd3   :  { %v1346_v22 = vmul.f32 0.5, %v3293_v20 }
0x1bd5   :  { %v1347_v23 = vadd.f32 0.5, %v1346_v22 }
0x1bd7   :  { %v1358_v31 = vsub.f32 1.0, %v1347_v23  ;;  %v1366_v35 = vmul.f32 %v1364_v32, %v1347_v23 }
0x1c36   :  { %v1349_v24 = vpop.permute.xlu1 %1348 }
0x1c37   :  { %v1351_v26 = vmul.f32 %v1349_v24, %v1347_v23 }
0x1c39   :  { %1353 = vrot.lane.b32.xlu0 %v1351_v26, %s3378_s0 }
0x1cab   :  { %v1354_v28 = vpop.permute.xlu0 %1353 }
0x1cac   :  { %v1356_v29 = vadd.f32 %v1354_v28, %v3599_v36 }
0x1cae   :  { %3294 = vtanh.f32 %v1356_v29 }
0x1cb8   :  { %v3295_v30 = vpop.eup %3294 }
0x1cb9   :  { %1360 = vrot.lane.b32.xlu1 %v3295_v30, %s3379_s29 }
0x1d2b   :  { %v1361_v33 = vpop.permute.xlu1 %1360 }
0x1d2c   :  { %v1363_v37 = vmul.f32 %v1361_v33, %v1358_v31 }
0x1d2e   :  { %v1367_v39 = vadd.f32 %v1366_v35, %v1363_v37 }
0x1d30   :  { %v1891_v41 = vrot.slane %v1367_v39, 2  ;;  %v1915_v42 = vrot.slane %v1367_v39, 3  ;;  %v1369_v43 = vrot.slane %v1367_v39, 4  ;;  %v1468_v2 = vrot.slane %v1367_v39, 6 }
0x1d32   :  { %1370 = vrot.lane.b32.xlu0 %v1369_v43, %s3379_s29  ;;  %v1924_v46 = vsel %vm955_vm3, %v1923_v45, %v1915_v42  ;;  %v1903_v47 = vsel %vm955_vm3, %v1902_v44, %v1891_v41 }
0x1da4   :  { %v1371_v49 = vpop.permute.xlu0 %1370 }
0x1da5   :  { %2977 = vmatmul.mubr.msk.f32.vlgmr.msra.gmra.mrb[12].mxu1 %vm128_vm2, %v1371_v49 }
0x1da6   :  { %3187 = vmatpush3.bf16.msra.mxu1 %v3564_v10  ;;  %2998 = vmatprep.mubr.msk.f32.mxu1 %vm3376_vm0, %v3377_v1 }
0x1da7   :  { %3188 = vmatprep.subr.bf16.mxu1 %v3375_v0 }
0x1daa   :  { %3190 = vmatpush3.bf16.msra.mxu1 %v3567_v48 }
0x1dab   :  { %3197 = vmatprep.subr.bf16.mxu1 %v3375_v0 }
0x1e78   :  { %v1440_v21 = vpop.f32.mrb[12].mxu1 }
0x1e79   :  { %v1441_v50 = vadd.f32 %v3586_v27, %v1440_v21  ;;  %v2978_v51 = vpop.f32.mrb[13].mxu1 }
0x1e7b   :  { %v1445_v52 = vrot.slane %v1441_v50, 2 }
0x1e7d   :  { %1452 = vrot.lane.b32.xlu1 %v1445_v52, %s3378_s0  ;;  %v1447_v53 = vadd.f32 %v1445_v52, %v3599_v36 }
0x1e7f   :  { %v1448_v54 = vmul.f32 0.5, %v1447_v53 }
0x1e81   :  { %3296 = vtanh.f32 %v1448_v54 }
0x1e8b   :  { %v3297_v55 = vpop.eup %3296 }
0x1e8c   :  { %v1450_v56 = vmul.f32 0.5, %v3297_v55 }
0x1e8e   :  { %v1451_v57 = vadd.f32 0.5, %v1450_v56 }
0x1e90   :  { %v1462_v63 = vsub.f32 1.0, %v1451_v57  ;;  %v1470_v4 = vmul.f32 %v1468_v2, %v1451_v57 }
0x1eef   :  { %v1453_v58 = vpop.permute.xlu1 %1452 }
0x1ef0   :  { %v1455_v59 = vmul.f32 %v1453_v58, %v1451_v57 }
0x1ef2   :  { %1457 = vrot.lane.b32.xlu0 %v1455_v59, %s3378_s0 }
0x1f64   :  { %v1458_v60 = vpop.permute.xlu0 %1457 }
0x1f65   :  { %v1460_v61 = vadd.f32 %v1458_v60, %v3599_v36 }
0x1f67   :  { %3298 = vtanh.f32 %v1460_v61 }
0x1f71   :  { %v3299_v62 = vpop.eup %3298 }
0x1f72   :  { %1464 = vrot.lane.b32.xlu1 %v3299_v62, %s3379_s29 }
0x1fe4   :  { %v1465_v3 = vpop.permute.xlu1 %1464 }
0x1fe5   :  { %v1467_v15 = vmul.f32 %v1465_v3, %v1462_v63 }
0x1fe7   :  { %v1471_v6 = vadd.f32 %v1470_v4, %v1467_v15 }
0x1fe9   :  { %v1893_v7 = vrot.slane %v1471_v6, 3  ;;  %v1917_v8 = vrot.slane %v1471_v6, 4  ;;  %v1473_v9 = vrot.slane %v1471_v6, 6 }
0x1feb   :  { %1474 = vrot.lane.b32.xlu0 %v1473_v9, %s3379_s29  ;;  %v1925_v12 = vsel %vm1904_vm7, %v1924_v46, %v1917_v8  ;;  %v1905_v13 = vsel %vm1904_vm7, %v1903_v47, %v1893_v7 }
0x205d   :  { %v1475_v5 = vpop.permute.xlu0 %1474 }
0x205e   :  { %2988 = vmatmul.mubr.msk.f32.vlgmr.msra.gmra.mrb[14].mxu0 %vm128_vm2, %v1475_v5 }
0x205f   :  { %3193 = vmatpush3.bf16.msra.mxu0 %v3564_v10  ;;  %3009 = vmatprep.mubr.msk.f32.mxu0 %vm3376_vm0, %v3377_v1 }
0x2060   :  { %3194 = vmatprep.subr.bf16.mxu0 %v3375_v0 }
0x2063   :  { %3196 = vmatpush3.bf16.msra.mxu0 %v3567_v48 }
0x2131   :  { %v1544_v36 = vpop.f32.mrb[14].mxu0 }
0x2132   :  { %v1545_v14 = vadd.f32 %v3586_v27, %v1544_v36  ;;  %v2989_v17 = vpop.f32.mrb[15].mxu0 }
0x2134   :  { %1554 = vrot.lane.b32.xlu1 %v1545_v14, %s3378_s0  ;;  %v1548_v18 = vadd.f32 %v1545_v14, %v3597_v34 }
0x2136   :  { %v1549_v16 = vmul.f32 0.5, %v1548_v18 }
0x2138   :  { %3300 = vtanh.f32 %v1549_v16 }
0x2142   :  { %v3301_v19 = vpop.eup %3300 }
0x2143   :  { %v1551_v11 = vmul.f32 0.5, %v3301_v19 }
0x2145   :  { %v1552_v20 = vadd.f32 0.5, %v1551_v11 }
0x2147   :  { %v1564_v29 = vsub.f32 1.0, %v1552_v20  ;;  %v1571_v31 = vmul.f32 %v1552_v20, %v1473_v9 }
0x21a6   :  { %v1555_v22 = vpop.permute.xlu1 %1554 }
0x21a7   :  { %v1557_v23 = vmul.f32 %v1555_v22, %v1552_v20 }
0x21a9   :  { %1559 = vrot.lane.b32.xlu0 %v1557_v23, %s3378_s0 }
0x221b   :  { %v1560_v24 = vpop.permute.xlu0 %1559 }
0x221c   :  { %v1562_v26 = vadd.f32 %v1560_v24, %v3597_v34 }
0x221e   :  { %3302 = vtanh.f32 %v1562_v26 }
0x2228   :  { %v3303_v28 = vpop.eup %3302 }
0x2229   :  { %1566 = vrot.lane.b32.xlu1 %v3303_v28, %s3379_s29 }
0x229b   :  { %v1567_v30 = vpop.permute.xlu1 %1566 }
0x229c   :  { %v1569_v32 = vmul.f32 %v1567_v30, %v1564_v29 }
0x229e   :  { %v1572_v33 = vadd.f32 %v1571_v31, %v1569_v32 }
0x22a0   :  { %v1895_v35 = vrot.slane %v1572_v33, 4  ;;  %v1919_v37 = vrot.slane %v1572_v33, 5  ;;  %1574 = vrot.lane.b32.xlu0 %v1572_v33, %s3379_s29  ;;  %v1672_v53 = vrot.slane %v1572_v33, 6 }
0x22a2   :  { %v3670_v38 = vsel %vm957_vm4, %v1925_v12, %v1919_v37  ;;  %v1906_v39 = vsel %vm957_vm4, %v1905_v13, %v1895_v35 }
0x2312   :  { %v1575_v40 = vpop.permute.xlu0 %1574 }
0x2313   :  { %2999 = vmatmul.mubr.msk.f32.vlgmr.msra.gmra.mrb[14].mxu1 %vm128_vm2, %v1575_v40 }
0x2314   :  { %3199 = vmatpush3.bf16.msra.mxu1 %v3564_v10  ;;  %3020 = vmatprep.mubr.msk.f32.mxu1 %vm3376_vm0, %v3377_v1 }
0x2315   :  { %3200 = vmatprep.subr.bf16.mxu1 %v3375_v0 }
0x2318   :  { %3202 = vmatpush3.bf16.msra.mxu1 %v3567_v48 }
0x2319   :  { %3034 = vmatprep.subr.mxu1 %v3377_v1 }
0x23e6   :  { %v1644_v41 = vpop.f32.mrb[14].mxu1 }
0x23e7   :  { %v1645_v42 = vadd.f32 %v3586_v27, %v1644_v41  ;;  %v3000_v43 = vpop.f32.mrb[15].mxu1 }
0x23e9   :  { %v1649_v44 = vrot.slane %v1645_v42, 6 }
0x23eb   :  { %1656 = vrot.lane.b32.xlu1 %v1649_v44, %s3378_s0  ;;  %v1651_v45 = vadd.f32 %v1649_v44, %v3597_v34 }
0x23ed   :  { %v1652_v46 = vmul.f32 0.5, %v1651_v45  ;;  %v1931_v45 = vld [vmem:[#allocation2 + $0x88] sm:$0xff] }
0x23ef   :  { %3304 = vtanh.f32 %v1652_v46  ;;  %v1932_v46 = vld [vmem:[#allocation2 + $0x90] sm:$0xff] }
0x23f9   :  { %v3305_v10 = vpop.eup %3304 }
0x23fa   :  { %v1654_v47 = vmul.f32 0.5, %v3305_v10 }
0x23fc   :  { %v1655_v49 = vadd.f32 0.5, %v1654_v47  ;;  %v1933_v47 = vld [vmem:[#allocation2 + $0x98] sm:$0xff] }
0x23fe   :  { %v1666_v52 = vsub.f32 1.0, %v1655_v49  ;;  %v1674_v56 = vmul.f32 %v1672_v53, %v1655_v49 }
0x245d   :  { %v1657_v21 = vpop.permute.xlu1 %1656 }
0x245e   :  { %v1659_v0 = vmul.f32 %v1657_v21, %v1655_v49  ;;  %v3207_v49 = vpack.c.bf16 %v1933_v47, %v1932_v46  ;;  %v2455_v47 = vld [vmem:[#allocation2 + $0xf0] sm:$0xff] }
0x2460   :  { %1661 = vrot.lane.b32.xlu0 %v1659_v0, %s3378_s0 }
0x24d2   :  { %v1662_v48 = vpop.permute.xlu0 %1661 }
0x24d3   :  { %v1664_v50 = vadd.f32 %v1662_v48, %v3597_v34 }
0x24d5   :  { %3306 = vtanh.f32 %v1664_v50 }
0x24df   :  { %v3307_v51 = vpop.eup %3306 }
0x24e0   :  { %1668 = vrot.lane.b32.xlu1 %v3307_v51, %s3379_s29 }
0x2552   :  { %v1669_v54 = vpop.permute.xlu1 %1668 }
0x2553   :  { %v1671_v55 = vmul.f32 %v1669_v54, %v1666_v52 }
0x2555   :  { %v1675_v57 = vadd.f32 %v1674_v56, %v1671_v55 }
0x2557   :  { %v1897_v58 = vrot.slane %v1675_v57, 5  ;;  %v1677_v59 = vrot.slane %v1675_v57, 2  ;;  %v1776_v17 = vrot.slane %v1675_v57, 6  ;;  %v2685_v57 = vld [vmem:[#allocation2 + $0xa0] ss:$0 sm:$0xff] }
0x2559   :  { %1678 = vrot.lane.b32.xlu0 %v1677_v59, %s3379_s29  ;;  %v1908_v60 = vsel %vm1907_vm8, %v1906_v39, %v1897_v58  ;;  %v1927_v24 = vsel %vm1907_vm8, %v3670_v38, %v1776_v17 }
0x25cb   :  { %v1679_v61 = vpop.permute.xlu0 %1678 }
0x25cc   :  { %3010 = vmatmul.mubr.msk.f32.vlgmr.msra.gmra.mrb[16].mxu0 %vm128_vm2, %v1679_v61 }
0x269f   :  { %v1748_v62 = vpop.f32.mrb[16].mxu0 }
0x26a0   :  { %v1749_v63 = vadd.f32 %v3586_v27, %v1748_v62  ;;  %v3011_v2 = vpop.f32.mrb[17].mxu0 }
0x26a2   :  { %v1753_v3 = vrot.slane %v1749_v63, 4 }
0x26a4   :  { %1760 = vrot.lane.b32.xlu1 %v1753_v3, %s3378_s0  ;;  %v1755_v4 = vadd.f32 %v1753_v3, %v3597_v34 }
0x26a6   :  { %v1756_v15 = vmul.f32 0.5, %v1755_v4 }
0x26a8   :  { %3308 = vtanh.f32 %v1756_v15 }
0x26b2   :  { %v3309_v6 = vpop.eup %3308 }
0x26b3   :  { %v1758_v7 = vmul.f32 0.5, %v3309_v6 }
0x26b5   :  { %v1759_v8 = vadd.f32 0.5, %v1758_v7 }
0x26b7   :  { %v1770_v14 = vsub.f32 1.0, %v1759_v8  ;;  %v1778_v16 = vmul.f32 %v1776_v17, %v1759_v8 }
0x2716   :  { %v1761_v9 = vpop.permute.xlu1 %1760 }
0x2717   :  { %v1763_v12 = vmul.f32 %v1761_v9, %v1759_v8 }
0x2719   :  { %1765 = vrot.lane.b32.xlu0 %v1763_v12, %s3378_s0 }
0x278b   :  { %v1766_v13 = vpop.permute.xlu0 %1765 }
0x278c   :  { %v1768_v5 = vadd.f32 %v1766_v13, %v3597_v34 }
0x278e   :  { %3310 = vtanh.f32 %v1768_v5 }
0x2798   :  { %v3311_v36 = vpop.eup %3310 }
0x2799   :  { %1772 = vrot.lane.b32.xlu1 %v3311_v36, %s3379_s29 }
0x280b   :  { %v1773_v18 = vpop.permute.xlu1 %1772 }
0x280c   :  { %v1775_v19 = vmul.f32 %v1773_v18, %v1770_v14 }
0x280e   :  { %v1779_v11 = vadd.f32 %v1778_v16, %v1775_v19 }
0x2810   :  { %v1921_v20 = vrot.slane %v1779_v11, 7  ;;  %v1781_v22 = vrot.slane %v1779_v11, 4  ;;  %v1880_v23 = vrot.slane %v1779_v11, 6 }
0x2812   :  { %1782 = vrot.lane.b32.xlu0 %v1781_v22, %s3379_s29  ;;  %v1928_v26 = vsel %vm959_vm5, %v1927_v24, %v1921_v20  ;;  %v1909_v28 = vsel %vm959_vm5, %v1908_v60, %v1880_v23  ;;  %v2356_v24 = vld [vmem:[#allocation2 + $0xb0] sm:$0xff] }
0x2884   :  { %v1783_v29 = vpop.permute.xlu0 %1782 }
0x2885   :  { %3021 = vmatmul.mubr.msk.f32.vlgmr.msra.gmra.mrb[16].mxu1 %vm128_vm2, %v1783_v29 }
0x2886   :  { %3036 = vmatprep.mubr.msk.f32.mxu1 %vm3376_vm0, %v3377_v1 }
0x2958   :  { %v1852_v30 = vpop.f32.mrb[16].mxu1 }
0x2959   :  { %v1853_v31 = vadd.f32 %v3586_v27, %v1852_v30  ;;  %v3022_v32 = vpop.f32.mrb[17].mxu1  ;;  %v1930_v27 = vld [vmem:[#allocation2 + $0x80] sm:$0xff] }
0x295a   :  { %v3203_v10 = vpack.c.bf16 %v1931_v45, %v1930_v27 }
0x295b   :  { %v1857_v33 = vrot.slane %v1853_v31, 2 }
0x295c   :  { %3204 = vmatprep.subr.bf16.mxu0 %v3203_v10 }
0x295d   :  { %1864 = vrot.lane.b32.xlu1 %v1857_v33, %s3378_s0  ;;  %v1859_v35 = vadd.f32 %v1857_v33, %v3597_v34  ;;  %3206 = vmatpush3.bf16.msra.mxu0 %v3203_v10 }
0x295e   :  { %3208 = vmatprep.subr.bf16.mxu0 %v3207_v49 }
0x295f   :  { %v1860_v37 = vmul.f32 0.5, %v1859_v35 }
0x2961   :  { %3312 = vtanh.f32 %v1860_v37  ;;  %3210 = vmatpush3.bf16.msra.mxu0 %v3207_v49  ;;  %v2357_v37 = vld [vmem:[#allocation2 + $0xb8] sm:$0xff] }
0x2962   :  { %3039 = vmatprep.subr.mxu0 %v3377_v1  ;;  %v2456_v49 = vld [vmem:[#allocation2 + $0xf8] sm:$0xff] }
0x296b   :  { %v3313_v38 = vpop.eup %3312 }
0x296c   :  { %v1862_v39 = vmul.f32 0.5, %v3313_v38  ;;  %v2358_v38 = vld [vmem:[#allocation2 + $0xc0] sm:$0xff] }
0x296e   :  { %v1863_v40 = vadd.f32 0.5, %v1862_v39  ;;  %v3215_v39 = vpack.c.bf16 %v2358_v38, %v2357_v37 }
0x2970   :  { %v1874_v0 = vsub.f32 1.0, %v1863_v40  ;;  %v1882_v50 = vmul.f32 %v1880_v23, %v1863_v40  ;;  %v2355_v23 = vld [vmem:[#allocation2 + $0xa8] sm:$0xff] }
0x29cf   :  { %v1865_v41 = vpop.permute.xlu1 %1864 }
0x29d0   :  { %v1867_v42 = vmul.f32 %v1865_v41, %v1863_v40  ;;  %v2451_v40 = vld [vmem:[#allocation2 + $0xd0] sm:$0xff]  ;;  %v2452_v41 = vld [vmem:[#allocation2 + $0xd8] sm:$0xff] }
0x29d2   :  { %1869 = vrot.lane.b32.xlu0 %v1867_v42, %s3378_s0  ;;  %v2453_v42 = vld [vmem:[#allocation2 + $0xe0] sm:$0xff] }
0x2a44   :  { %v1870_v43 = vpop.permute.xlu0 %1869 }
0x2a45   :  { %v1872_v44 = vadd.f32 %v1870_v43, %v3597_v34  ;;  %v3219_v43 = vpack.c.bf16 %v2452_v41, %v2451_v40 }
0x2a47   :  { %3314 = vtanh.f32 %v1872_v44  ;;  %v2454_v44 = vld [vmem:[#allocation2 + $0xe8] sm:$0xff] }
0x2a48   :  { %v3223_v27 = vpack.c.bf16 %v2454_v44, %v2453_v42 }
0x2a51   :  { %v3315_v21 = vpop.eup %3314 }
0x2a52   :  { %1876 = vrot.lane.b32.xlu1 %v3315_v21, %s3379_s29  ;;  %v3227_v21 = vpack.c.bf16 %v2456_v49, %v2455_v47 }
0x2ac4   :  { %v1877_v48 = vpop.permute.xlu1 %1876 }
0x2ac5   :  { %v1879_v34 = vmul.f32 %v1877_v48, %v1874_v0  ;;  %v2457_v0 = vld [vmem:[#allocation2 + $0x100] sm:$0xff]  ;;  %v2458_v48 = vld [vmem:[#allocation2 + $0x108] sm:$0xff] }
0x2ac7   :  { %v1883_v51 = vadd.f32 %v1882_v50, %v1879_v34  ;;  %v3231_v50 = vpack.c.bf16 %v2458_v48, %v2457_v0  ;;  %v2694_v34 = vld [vmem:[#allocation2 + $0xc8] ss:$0 sm:$0xff] }
0x2ac9   :  { %v1929_v52 = vsel %vm1910_vm9, %v1928_v26, %v1883_v51  ;;  %v1899_v53 = vrot.slane %v1883_v51, 7  ;;  %v3211_v26 = vpack.c.bf16 %v2356_v24, %v2355_v23 }
0x2aca   :  { %1943 = vrot.lane.b32.xlu1 %v1929_v52, %s3379_s29 }
0x2acb   :  { %v1911_v54 = vsel %vm1910_vm9, %v1909_v28, %v1899_v53 }
0x2acc   :  { %1941 = vrot.lane.b32.xlu0 %v1911_v54, %s3379_s29 }
0x2b3c   :  { %v1944_v56 = vpop.permute.xlu1 %1943 }
0x2b3e   :  { %v1942_v55 = vpop.permute.xlu0 %1941 }
0x2b3f   :  { %3031 = vmatprep.mubr.msk.f32.mxu0 %vm128_vm2, %v1942_v55 }
0x2b40   :  { %3032 = vmatmul.mubr.msk.f32.vlgmr.msra.gmra.mrb[18].mxu0 %vm128_vm2, %v1944_v56 }
0x2b41   :  { %3041 = vmatprep.mubr.msk.f32.mxu0 %vm3376_vm0, %v3377_v1 }
0x2c13   :  { %v3033_v58 = vpop.f32.mrb[18].mxu0 }
0x2c14   :  { %v2021_v59 = vadd.f32 %v3033_v58, %v2685_v57  ;;  %v2015_v60 = vpop.f32.mrb[19].mxu0 }
0x2c15   :  { %v2016_v61 = vadd.f32 %v2685_v57, %v2015_v60  ;;  %v2553_v60 = vld [vmem:[#allocation2 + $0x120] sm:$0xff] }
0x2c16   :  { %2191 = vrot.lane.b32.xlu1 %v2021_v59, %s3379_s29 }
0x2c17   :  { %2025 = vrot.lane.b32.xlu0 %v2016_v61, %s3379_s29 }
0x2c88   :  { %v2192_v63 = vpop.permute.xlu1 %2191 }
0x2c89   :  { %v2026_v62 = vpop.permute.xlu0 %2025 }
0x2c8a   :  { %3035 = vmatpush3.xpose.msk.msra.mxu1 %vm128_vm2, %v2026_v62  ;;  %v2554_v62 = vld [vmem:[#allocation2 + $0x128] sm:$0xff] }
0x2c8b   :  { %3044 = vmatprep.subr.mxu1 %v3377_v1 }
0x2c8d   :  { %3037 = vmatmul.mubr.msk.f32.vlgmr.msra.gmra.mrb[18].mxu1 %vm128_vm2, %v2016_v61 }
0x2c8e   :  { %3045 = vmatpush3.xpose.msk.msra.mxu1 %vm128_vm2, %v2192_v63  ;;  %3046 = vmatprep.mubr.msk.f32.mxu1 %vm3376_vm0, %v3377_v1  ;;  %v2555_v63 = vld [vmem:[#allocation2 + $0x130] sm:$0xff] }
0x2c8f   :  { %3212 = vmatprep.subr.bf16.mxu1 %v3211_v26 }
0x2c91   :  { %3047 = vmatmul.mubr.msk.f32.vlgmr.msra.gmra.mrb[20].mxu1 %vm128_vm2, %v2021_v59 }
0x2c92   :  { %3214 = vmatpush3.bf16.msra.mxu1 %v3211_v26 }
0x2c93   :  { %3216 = vmatprep.subr.bf16.mxu1 %v3215_v39 }
0x2c96   :  { %3218 = vmatpush3.bf16.msra.mxu1 %v3215_v39 }
0x2d60   :  { %v2097_v2 = vpop.f32.mrb[18].mxu1 }
0x2d61   :  { %v2101_v3 = vmul.f32 0.17677669, %v2097_v2  ;;  %v3038_v4 = vpop.f32.mrb[19].mxu1  ;;  %v3239_v2 = vpack.c.bf16 %v2555_v63, %v2554_v62 }
0x2d63   :  { %v2103_v15 = vsel %vm2102_vm10, %v2101_v3, -inf }
0x2d64   :  { %2104 = vmax.xlane.f32.xlu0 %v2103_v15  ;;  %v2263_v6 = vpop.f32.mrb[20].mxu1 }
0x2d65   :  { %v2267_v7 = vmul.f32 0.17677669, %v2263_v6  ;;  %v3048_v8 = vpop.f32.mrb[21].mxu1 }
0x2d67   :  { %v2268_v9 = vsel %vm2102_vm10, %v2267_v7, -inf }
0x2d68   :  { %2269 = vmax.xlane.f32.xlu1 %v2268_v9 }
0x2d79   :  { %2114 = vrot.lane.b32.xlu1 %v2016_v61, %s3378_s0 }
0x2d7d   :  { %950 = vrot.lane.b32.xlu1 %v3581_v25, %s3379_s29 }
0x2d81   :  { %1885 = vrot.lane.b32.xlu1 %v1883_v51, %s3379_s29 }
0x2df1   :  { %v2105_v12 = vpop.xlane.xlu0 %2104 }
0x2df2   :  { %v2106_v13 = vsub.f32 %v2101_v3, %v2105_v12  ;;  %v2697_v3 = vld [vmem:[#allocation2 + $0x110] ss:$0 sm:$0xff] }
0x2df4   :  { %v2107_v5 = vmul.f32 1.442695, %v2106_v13 }
0x2df5   :  { %v2270_v36 = vpop.xlane.xlu1 %2269 }
0x2df6   :  { %3316 = vpow2.f32 %v2107_v5  ;;  %v2271_v14 = vsub.f32 %v2267_v7, %v2270_v36 }
0x2df8   :  { %v2272_v17 = vmul.f32 1.442695, %v2271_v14 }
0x2df9   :  { %v2115_v18 = vpop.permute.xlu1 %2114 }
0x2dfa   :  { %3318 = vpow2.f32 %v2272_v17  ;;  %3040 = vmatpush3.msra.mxu0 %v2115_v18 }
0x2dfb   :  { %3049 = vmatprep.subr.mxu0 %v3377_v1 }
0x2dfd   :  { %v951_v16 = vpop.permute.xlu1 %950 }
0x2dfe   :  { %954 = vst.msk [vmem:[#allocation5 - $0x6] sm:$0xc0] %vm953_vm11, %v951_v16 }
0x2e00   :  { %v3317_v19 = vpop.eup %3316 }
0x2e01   :  { %v1886_v11 = vpop.permute.xlu1 %1885  ;;  %v2109_v25 = vsel %vm2102_vm10, %v3317_v19, 0.0 }
0x2e02   :  { %1888 = vst.msk [vmem:[#allocation5 - $0x4] sm:$0xc0] %vm953_vm11, %v1886_v11  ;;  %2110 = vadd.xlane.f32.xlu0 %v2109_v25 }
0x2e04   :  { %v3319_v20 = vpop.eup %3318 }
0x2e05   :  { %v2274_v22 = vsel %vm2102_vm10, %v3319_v20, 0.0 }
0x2e06   :  { %2275 = vadd.xlane.f32.xlu0 %v2274_v22 }
0x2e1c   :  { %2279 = vrot.lane.b32.xlu0 %v2021_v59, %s3378_s0  ;;  %v2552_v59 = vld [vmem:[#allocation2 + $0x118] sm:$0xff] }
0x2e1d   :  { %v3235_v61 = vpack.c.bf16 %v2553_v60, %v2552_v59 }
0x2e1f   :  { %3236 = vmatprep.subr.bf16.mxu1 %v3235_v61 }
0x2e8f   :  { %v2111_v28 = vpop.xlane.xlu0 %2110 }
0x2e90   :  { %3320 = vrcp.f32 %v2111_v28 }
0x2e93   :  { %v2276_v29 = vpop.xlane.xlu0 %2275 }
0x2e94   :  { %3322 = vrcp.f32 %v2276_v29 }
0x2e97   :  { %v2280_v32 = vpop.permute.xlu0 %2279 }
0x2e9a   :  { %v3321_v30 = vpop.eup %3320 }
0x2e9b   :  { %v2113_v31 = vmul.f32 %v3321_v30, %v3317_v19 }
0x2e9d   :  { %3042 = vmatmul.mubr.msk.f32.vlgmr.msra.gmra.mrb[20].mxu0 %vm2102_vm10, %v2113_v31 }
0x2e9e   :  { %v3323_v33 = vpop.eup %3322  ;;  %3050 = vmatpush3.msra.mxu0 %v2280_v32  ;;  %3051 = vmatprep.mubr.msk.f32.mxu0 %vm3376_vm0, %v3377_v1 }
0x2e9f   :  { %v2278_v35 = vmul.f32 %v3323_v33, %v3319_v20  ;;  %3220 = vmatprep.subr.bf16.mxu0 %v3219_v43 }
0x2ea1   :  { %3052 = vmatmul.mubr.msk.f32.vlgmr.msra.gmra.mrb[22].mxu0 %vm2102_vm10, %v2278_v35 }
0x2ea2   :  { %3222 = vmatpush3.bf16.msra.mxu0 %v3219_v43 }
0x2ea3   :  { %3224 = vmatprep.subr.bf16.mxu0 %v3223_v27 }
0x2ea6   :  { %3226 = vmatpush3.bf16.msra.mxu0 %v3223_v27 }
0x2ea7   :  { %3228 = vmatprep.subr.bf16.mxu0 %v3227_v21 }
0x2eaa   :  { %3230 = vmatpush3.bf16.msra.mxu0 %v3227_v21 }
0x2eab   :  { %3232 = vmatprep.subr.bf16.mxu0 %v3231_v50 }
0x2eae   :  { %3234 = vmatpush3.bf16.msra.mxu0 %v3231_v50 }
0x2f70   :  { %v2186_v45 = vpop.f32.mrb[20].mxu0 }
0x2f71   :  { %v3043_v1 = vpop.f32.mrb[21].mxu0  ;;  %3062 = vmatprep.mubr.msk.f32.mxu1 %vm128_vm2, %v2186_v45 }
0x2f74   :  { %v2351_v46 = vpop.f32.mrb[22].mxu0 }
0x2f75   :  { %v3053_v10 = vpop.f32.mrb[23].mxu0  ;;  %3063 = vmatmul.mubr.msk.f32.vlgmr.msra.gmra.mrb[22].mxu1 %vm128_vm2, %v2351_v46 }
0x2f76   :  { %3238 = vmatpush3.bf16.msra.mxu1 %v3235_v61 }
0x2f77   :  { %3240 = vmatprep.subr.bf16.mxu1 %v3239_v2 }
0x2f7a   :  { %3242 = vmatpush3.bf16.msra.mxu1 %v3239_v2 }
0x3048   :  { %v3064_v51 = vpop.f32.mrb[22].mxu1 }
0x3049   :  { %v2442_v52 = vadd.f32 %v3064_v51, %v2694_v34  ;;  %v2436_v53 = vpop.f32.mrb[23].mxu1 }
0x304a   :  { %v2437_v54 = vadd.f32 %v2694_v34, %v2436_v53 }
0x304b   :  { %v2448_v55 = vmul.f32 0.01, %v2442_v52  ;;  %vm2446_vm12 = vcmp.gt.f32.partialorder %v2442_v52, 0.0 }
0x304c   :  { %vm2445_vm13 = vcmp.gt.f32.partialorder %v2437_v54, 0.0  ;;  %v2447_v56 = vmul.f32 0.01, %v2437_v54 }
0x304d   :  { %v2450_v58 = vsel %vm2446_vm12, %v2442_v52, %v2448_v55 }
0x304e   :  { %v2449_v57 = vsel %vm2445_vm13, %v2437_v54, %v2447_v56 }
0x304f   :  { %3081 = vmatprep.mubr.msk.f32.mxu0 %vm2464_vm14, %v2449_v57 }
0x3050   :  { %3082 = vmatmul.mubr.msk.f32.vlgmr.msra.gmra.mrb[24].mxu0 %vm2464_vm14, %v2450_v58 }
0x3123   :  { %v3083_v4 = vpop.f32.mrb[24].mxu0 }
0x3124   :  { %v2543_v15 = vadd.f32 %v3083_v4, %v2697_v3  ;;  %v2537_v6 = vpop.f32.mrb[25].mxu0 }
0x3125   :  { %v2538_v7 = vadd.f32 %v2697_v3, %v2537_v6 }
0x3126   :  { %v2549_v8 = vmul.f32 0.01, %v2543_v15  ;;  %vm2547_vm15 = vcmp.gt.f32.partialorder %v2543_v15, 0.0 }
0x3127   :  { %vm2546_vm0 = vcmp.gt.f32.partialorder %v2538_v7, 0.0  ;;  %v2548_v9 = vmul.f32 0.01, %v2538_v7 }
0x3128   :  { %v2551_v13 = vsel %vm2547_vm15, %v2543_v15, %v2549_v8 }
0x3129   :  { %v2550_v12 = vsel %vm2546_vm0, %v2538_v7, %v2548_v9 }
0x312a   :  { %3092 = vmatprep.mubr.msk.f32.mxu1 %vm128_vm2, %v2550_v12 }
0x312b   :  { %3093 = vmatmul.mubr.msk.f32.vlgmr.msra.gmra.mrb[24].mxu1 %vm128_vm2, %v2551_v13 }
0x312c   :  { %3357 = shalt.err (!%p3354_p12)
}
0x312d   :  { %s3358_s8 = scalar_lea.hbm %s3764_s3, 64 }
0x312e   :  { %p3359_p13 = scmp.ne.s32.totalorder %s3764_s3, %s3358_s8  ;;  %p3362_p0 = scmp.lt.u32.totalorder %s3358_s8, %s3764_s3 }
0x3130   :  { %p3364_p1 = pnand %p3362_p0, %p3359_p13 }
0x3132   :  { %3367 = shalt.err (!%p3364_p1)
}
0x3133   :  { %2655 = dma.vmem_to_hbm [thread:$0]  %s2653_s4, 64, %s3764_s3, [#allocation4]   ;;  %v2700_v5 = vld [vmem:[#allocation2 + $0x138] ss:$0 sm:$0xff] }
0x31fe   :  { %v3094_v36 = vpop.f32.mrb[24].mxu1 }
0x31ff   :  { %v2639_v14 = vadd.f32 %v3094_v36, %v2700_v5  ;;  %v2633_v17 = vpop.f32.mrb[25].mxu1 }
0x3200   :  { %v2634_v18 = vadd.f32 %v2700_v5, %v2633_v17 }
0x3201   :  { %2643 = vst [vmem:[%s3763_s2 + $0x8] sm:$0xff] %v2639_v14 }
0x3202   :  { %2642 = vst [vmem:[%s3763_s2] sm:$0xff] %v2634_v18 }
0x3203   :  { %3370 = dma.done.wait [#allocation4], 64  }
0x3204   :  { %3371 = vsyncadd [#allocation4], 4294967232 }
0x3205   :  { %2661 = vsyncpa [#allocation3], 1 }
0x3206   :  { %2662 = vsyncpa [#allocation4], 1 }

</bundles_post_ra>
